<compile_context>
chip_gen: v6e
topology: v6e:2x2x1
jax: 0.10.0
libtpu: 0.0.40
codegen_flags: <defaults>
</compile_context>

<pallas_src>
import jax
import jax.numpy as jnp
from jax.experimental import pallas as pl
from jax.experimental.pallas import tpu as pltpu

EPS = 1e-5

# Static architecture config: (kernel_size, padding) per stage.  Kept OUT of
# the jitted pytree so kernel sizes never become tracers.
LAYER_CFG = ((7, 3), (3, 1), (1, 0), (1, 0))


# ----------------------------------------------------------------------------
# Pallas kernel: fused conv(+BN folded) + bias + ReLU + 2x2 maxpool for one stage
# ----------------------------------------------------------------------------
def stage_kernel(p_ref, w_ref, b_ref, o_ref):
    # p_ref: (4, M, K)   bf16 im2col patches, one slab per 2x2 maxpool tap
    # w_ref: (K, CoutP)  bf16 weights with the BN scale folded in
    # b_ref: (1, CoutP)  f32 fused bias (conv bias * scale + BN shift)
    # o_ref: (M, CoutP)  pooled + ReLU'd activations
    w = w_ref[...]
    b = b_ref[...]
    acc = None
    for t in range(4):  # static unrolled loop over the 4 pooling taps
        y = jnp.dot(p_ref[t], w, preferred_element_type=jnp.float32) + b
        acc = y if acc is None else jnp.maximum(acc, y)
    # max(relu(y_t)) == relu(max(y_t)) so a single ReLU at the end is exact.
    o_ref[...] = jnp.maximum(acc, 0.0).astype(o_ref.dtype)


def conv_bn_relu_maxpool(patches, w_mat, b_fused, out_dtype):
    _, M, _ = patches.shape
    coutp = w_mat.shape[1]
    return pl.pallas_call(
        stage_kernel,
        out_shape=jax.ShapeDtypeStruct((M, coutp), out_dtype),
        in_specs=[pl.BlockSpec(memory_space=pltpu.MemorySpace.VMEM)] * 3,
        out_specs=pl.BlockSpec(memory_space=pltpu.MemorySpace.VMEM),
    )(patches, w_mat, b_fused)


# ----------------------------------------------------------------------------
# XLA-side glue: pool-tap im2col (tiny arrays; everything heavy is in Pallas)
# ----------------------------------------------------------------------------
def extract_pool_patches(x_nhwc, k, pad):
    """(N,H,W,C) -> (4, N*Ho*Wo, k*k*C).

    Tap t = 2*hi + wi holds the im2col patches of the conv output positions
    (2*ho + hi, 2*wo + wi), i.e. the four inputs of each 2x2 maxpool window.
    """
    N, H, W, C = x_nhwc.shape
    Ho, Wo = H // 2, W // 2
    xp = jnp.pad(x_nhwc, ((0, 0), (pad, pad), (pad, pad), (0, 0)))
    taps = []
    for hi in range(2):
        for wi in range(2):
            cols = []
            for di in range(k):
                for dj in range(k):
                    cols.append(xp[:, hi + di:hi + di + H:2,
                                   wi + dj:wi + dj + W:2, :])
            taps.append(jnp.concatenate(cols, axis=-1)
                        .reshape(N * Ho * Wo, k * k * C))
    return jnp.stack(taps, axis=0)


# ----------------------------------------------------------------------------
# One-time parameter prep (outside jit): BN fold, channel padding, bf16 layout
# ----------------------------------------------------------------------------
def prepare_params(raw_params):
    prepared = []
    prev_coutp = None
    for p in raw_params:
        w, bias = p["w"], p["b"]                      # (Cout, Cin, kh, kw)
        cout, cin, kh, kw = w.shape
        scale = p["gamma"] / jnp.sqrt(p["rvar"] + EPS)
        shift = p["beta"] - p["rmean"] * scale
        b_fused = bias * scale + shift                # (Cout,)
        w_mat = jnp.transpose(w, (2, 3, 1, 0))        # (kh, kw, Cin, Cout)
        w_mat = w_mat * scale[None, None, None, :]    # fold BN scale
        # Pad input channels to match the previous layer's padded output.
        cinp = cin if prev_coutp is None else prev_coutp
        if cinp > cin:
            w_mat = jnp.pad(w_mat, ((0, 0), (0, 0), (0, cinp - cin), (0, 0)))
        # Pad output channels to a multiple of 128 for lane-dense stores.
        coutp = max(128, ((cout + 127) // 128) * 128)
        if coutp > cout:
            w_mat = jnp.pad(w_mat, ((0, 0), (0, 0), (0, 0), (0, coutp - cout)))
            b_fused = jnp.pad(b_fused, (0, coutp - cout))
        prepared.append((
            w_mat.reshape(kh * kw * cinp, coutp).astype(jnp.bfloat16),
            b_fused.reshape(1, coutp).astype(jnp.float32),
        ))
        prev_coutp = coutp
    return prepared


# ----------------------------------------------------------------------------
# Parameter init (deterministic, nn.Module shapes; BN at PyTorch defaults)
# ----------------------------------------------------------------------------
def init_params(key):
    specs = [  # (Cout, Cin, kh, kw)
        (64, 1, 7, 7),
        (128, 64, 3, 3),
        (256, 128, 1, 1),
        (10, 256, 1, 1),
    ]
    params = []
    for spec in specs:
        key, kw_, kb_ = jax.random.split(key, 3)
        cout = spec[0]
        w = jax.random.normal(kw_, spec, jnp.float32) * 0.05
        b = jax.random.normal(kb_, (cout,), jnp.float32) * 0.05
        # BatchNorm2d default init / running stats (inference semantics).
        params.append(dict(
            w=w, b=b,
            gamma=jnp.ones((cout,), jnp.float32),
            beta=jnp.zeros((cout,), jnp.float32),
            rmean=jnp.zeros((cout,), jnp.float32),
            rvar=jnp.ones((cout,), jnp.float32),
        ))
    return params


# ----------------------------------------------------------------------------
# Forward pass
# ----------------------------------------------------------------------------
@jax.jit
def mnist_model_forward(x_nchw, prepared):
    # TODO(synk): BatchNorm uses running stats (eval-mode semantics); a
    # PyTorch module in training mode would use batch statistics instead.
    x = jnp.transpose(x_nchw, (0, 2, 3, 1)).astype(jnp.bfloat16)  # NCHW->NHWC
    n_layers = len(prepared)
    for idx, (w_mat, b_fused) in enumerate(prepared):
        k, pad = LAYER_CFG[idx]
        N, H, W, _ = x.shape
        Ho, Wo = H // 2, W // 2
        patches = extract_pool_patches(x, k, pad)          # (4, N*Ho*Wo, K)
        last = idx == n_layers - 1
        out_dtype = jnp.float32 if last else jnp.bfloat16
        y = conv_bn_relu_maxpool(patches, w_mat, b_fused, out_dtype)
        x = y.reshape(N, Ho, Wo, y.shape[-1])
    # AdaptiveAvgPool2d(1) over the remaining spatial extent (1x1 here, so a
    # reshape), then drop the zero-padded channels -> logits.  Trivial glue.
    N, Hf, Wf, CP = x.shape
    logits = jnp.mean(x.reshape(N, Hf * Wf, CP), axis=1)[:, :10]
    return logits.reshape(-1, 10)                           # output.view(-1, 10)


if __name__ == "__main__":
    key = jax.random.PRNGKey(0)
    k_in, k_par = jax.random.split(key)
    # MNIST-style single-channel input; 16x16 spatial survives the 4 maxpools.
    x = jax.random.normal(k_in, (2, 1, 16, 16), jnp.float32)
    raw_params = init_params(k_par)
    prepared = prepare_params(raw_params)   # one-time prep, outside jit

    out = mnist_model_forward(x, prepared)
    out = jax.block_until_ready(out)
    assert out.shape == (2, 10), out.shape
    assert bool(jnp.all(jnp.isfinite(out)))
    print("KERNEL_OK")
</pallas_src>

<mosaic_0001>
module attributes {stable_mosaic.version = 11 : i64} {
  func.func @stage_kernel(%arg0: memref<4x128x49xbf16, #tpu.memory_space<vmem>>, %arg1: memref<49x128xbf16, #tpu.memory_space<vmem>>, %arg2: memref<1x128xf32, #tpu.memory_space<vmem>>, %arg3: memref<128x128xbf16, #tpu.memory_space<vmem>>) attributes {dimension_semantics = [], scalar_prefetch = 0 : i64, scratch_operands = 0 : i64, tpu.core_type = #tpu.core_type<tc>} {
    %c0 = arith.constant 0 : index
    %c0_0 = arith.constant 0 : index
    %0 = vector.load %arg1[%c0, %c0_0] : memref<49x128xbf16, #tpu.memory_space<vmem>>, vector<49x128xbf16>
    %c0_1 = arith.constant 0 : index
    %c0_2 = arith.constant 0 : index
    %1 = vector.load %arg2[%c0_1, %c0_2] : memref<1x128xf32, #tpu.memory_space<vmem>>, vector<1x128xf32>
    %c0_3 = arith.constant 0 : index
    %c0_4 = arith.constant 0 : index
    %c0_5 = arith.constant 0 : index
    %2 = vector.load %arg0[%c0_3, %c0_4, %c0_5] : memref<4x128x49xbf16, #tpu.memory_space<vmem>>, vector<1x128x49xbf16>
    %3 = vector.shape_cast %2 : vector<1x128x49xbf16> to vector<128x49xbf16>
    %cst = arith.constant dense<0.000000e+00> : vector<128x128xf32>
    %4 = tpu.matmul %3, %0, %cst {dimension_numbers = #tpu.dot_dimension_numbers<[1], [0], [0], [1], [0, 0, 1, 1], [], []>} : vector<128x49xbf16>, vector<49x128xbf16>, vector<128x128xf32> -> vector<128x128xf32>
    %5 = vector.broadcast %1 : vector<1x128xf32> to vector<128x128xf32>
    %6 = arith.addf %4, %5 : vector<128x128xf32>
    %c1 = arith.constant 1 : index
    %c0_6 = arith.constant 0 : index
    %c0_7 = arith.constant 0 : index
    %7 = vector.load %arg0[%c1, %c0_6, %c0_7] : memref<4x128x49xbf16, #tpu.memory_space<vmem>>, vector<1x128x49xbf16>
    %8 = vector.shape_cast %7 : vector<1x128x49xbf16> to vector<128x49xbf16>
    %cst_8 = arith.constant dense<0.000000e+00> : vector<128x128xf32>
    %9 = tpu.matmul %8, %0, %cst_8 {dimension_numbers = #tpu.dot_dimension_numbers<[1], [0], [0], [1], [0, 0, 1, 1], [], []>} : vector<128x49xbf16>, vector<49x128xbf16>, vector<128x128xf32> -> vector<128x128xf32>
    %10 = vector.broadcast %1 : vector<1x128xf32> to vector<128x128xf32>
    %11 = arith.addf %9, %10 : vector<128x128xf32>
    %12 = arith.maximumf %6, %11 : vector<128x128xf32>
    %c2 = arith.constant 2 : index
    %c0_9 = arith.constant 0 : index
    %c0_10 = arith.constant 0 : index
    %13 = vector.load %arg0[%c2, %c0_9, %c0_10] : memref<4x128x49xbf16, #tpu.memory_space<vmem>>, vector<1x128x49xbf16>
    %14 = vector.shape_cast %13 : vector<1x128x49xbf16> to vector<128x49xbf16>
    %cst_11 = arith.constant dense<0.000000e+00> : vector<128x128xf32>
    %15 = tpu.matmul %14, %0, %cst_11 {dimension_numbers = #tpu.dot_dimension_numbers<[1], [0], [0], [1], [0, 0, 1, 1], [], []>} : vector<128x49xbf16>, vector<49x128xbf16>, vector<128x128xf32> -> vector<128x128xf32>
    %16 = vector.broadcast %1 : vector<1x128xf32> to vector<128x128xf32>
    %17 = arith.addf %15, %16 : vector<128x128xf32>
    %18 = arith.maximumf %12, %17 : vector<128x128xf32>
    %c3 = arith.constant 3 : index
    %c0_12 = arith.constant 0 : index
    %c0_13 = arith.constant 0 : index
    %19 = vector.load %arg0[%c3, %c0_12, %c0_13] : memref<4x128x49xbf16, #tpu.memory_space<vmem>>, vector<1x128x49xbf16>
    %20 = vector.shape_cast %19 : vector<1x128x49xbf16> to vector<128x49xbf16>
    %cst_14 = arith.constant dense<0.000000e+00> : vector<128x128xf32>
    %21 = tpu.matmul %20, %0, %cst_14 {dimension_numbers = #tpu.dot_dimension_numbers<[1], [0], [0], [1], [0, 0, 1, 1], [], []>} : vector<128x49xbf16>, vector<49x128xbf16>, vector<128x128xf32> -> vector<128x128xf32>
    %22 = vector.broadcast %1 : vector<1x128xf32> to vector<128x128xf32>
    %23 = arith.addf %21, %22 : vector<128x128xf32>
    %24 = arith.maximumf %18, %23 : vector<128x128xf32>
    %cst_15 = arith.constant 0.000000e+00 : f32
    %25 = vector.broadcast %cst_15 : f32 to vector<128x128xf32>
    %26 = arith.maximumf %24, %25 : vector<128x128xf32>
    %27 = arith.truncf %26 : vector<128x128xf32> to vector<128x128xbf16>
    %c0_16 = arith.constant 0 : index
    %c0_17 = arith.constant 0 : index
    %28 = vector.load %arg3[%c0_16, %c0_17] : memref<128x128xbf16, #tpu.memory_space<vmem>>, vector<128x128xbf16>
    tpu.vector_store %arg3[%c0_16, %c0_17], %27 {strides = array<i32>} : memref<128x128xbf16, #tpu.memory_space<vmem>>, vector<128x128xbf16>,
    return
  }
}

module attributes {stable_mosaic.version = 11 : i64} {
  func.func @stage_kernel(%arg0: memref<4x32x1152xbf16, #tpu.memory_space<vmem>>, %arg1: memref<1152x128xbf16, #tpu.memory_space<vmem>>, %arg2: memref<1x128xf32, #tpu.memory_space<vmem>>, %arg3: memref<32x128xbf16, #tpu.memory_space<vmem>>) attributes {dimension_semantics = [], scalar_prefetch = 0 : i64, scratch_operands = 0 : i64, tpu.core_type = #tpu.core_type<tc>} {
    %c0 = arith.constant 0 : index
    %c0_0 = arith.constant 0 : index
    %0 = vector.load %arg1[%c0, %c0_0] : memref<1152x128xbf16, #tpu.memory_space<vmem>>, vector<1152x128xbf16>
    %c0_1 = arith.constant 0 : index
    %c0_2 = arith.constant 0 : index
    %1 = vector.load %arg2[%c0_1, %c0_2] : memref<1x128xf32, #tpu.memory_space<vmem>>, vector<1x128xf32>
    %c0_3 = arith.constant 0 : index
    %c0_4 = arith.constant 0 : index
    %c0_5 = arith.constant 0 : index
    %2 = vector.load %arg0[%c0_3, %c0_4, %c0_5] : memref<4x32x1152xbf16, #tpu.memory_space<vmem>>, vector<1x32x1152xbf16>
    %3 = vector.shape_cast %2 : vector<1x32x1152xbf16> to vector<32x1152xbf16>
    %cst = arith.constant dense<0.000000e+00> : vector<32x128xf32>
    %4 = tpu.matmul %3, %0, %cst {dimension_numbers = #tpu.dot_dimension_numbers<[1], [0], [0], [1], [0, 0, 1, 1], [], []>} : vector<32x1152xbf16>, vector<1152x128xbf16>, vector<32x128xf32> -> vector<32x128xf32>
    %5 = vector.broadcast %1 : vector<1x128xf32> to vector<32x128xf32>
    %6 = arith.addf %4, %5 : vector<32x128xf32>
    %c1 = arith.constant 1 : index
    %c0_6 = arith.constant 0 : index
    %c0_7 = arith.constant 0 : index
    %7 = vector.load %arg0[%c1, %c0_6, %c0_7] : memref<4x32x1152xbf16, #tpu.memory_space<vmem>>, vector<1x32x1152xbf16>
    %8 = vector.shape_cast %7 : vector<1x32x1152xbf16> to vector<32x1152xbf16>
    %cst_8 = arith.constant dense<0.000000e+00> : vector<32x128xf32>
    %9 = tpu.matmul %8, %0, %cst_8 {dimension_numbers = #tpu.dot_dimension_numbers<[1], [0], [0], [1], [0, 0, 1, 1], [], []>} : vector<32x1152xbf16>, vector<1152x128xbf16>, vector<32x128xf32> -> vector<32x128xf32>
    %10 = vector.broadcast %1 : vector<1x128xf32> to vector<32x128xf32>
    %11 = arith.addf %9, %10 : vector<32x128xf32>
    %12 = arith.maximumf %6, %11 : vector<32x128xf32>
    %c2 = arith.constant 2 : index
    %c0_9 = arith.constant 0 : index
    %c0_10 = arith.constant 0 : index
    %13 = vector.load %arg0[%c2, %c0_9, %c0_10] : memref<4x32x1152xbf16, #tpu.memory_space<vmem>>, vector<1x32x1152xbf16>
    %14 = vector.shape_cast %13 : vector<1x32x1152xbf16> to vector<32x1152xbf16>
    %cst_11 = arith.constant dense<0.000000e+00> : vector<32x128xf32>
    %15 = tpu.matmul %14, %0, %cst_11 {dimension_numbers = #tpu.dot_dimension_numbers<[1], [0], [0], [1], [0, 0, 1, 1], [], []>} : vector<32x1152xbf16>, vector<1152x128xbf16>, vector<32x128xf32> -> vector<32x128xf32>
    %16 = vector.broadcast %1 : vector<1x128xf32> to vector<32x128xf32>
    %17 = arith.addf %15, %16 : vector<32x128xf32>
    %18 = arith.maximumf %12, %17 : vector<32x128xf32>
    %c3 = arith.constant 3 : index
    %c0_12 = arith.constant 0 : index
    %c0_13 = arith.constant 0 : index
    %19 = vector.load %arg0[%c3, %c0_12, %c0_13] : memref<4x32x1152xbf16, #tpu.memory_space<vmem>>, vector<1x32x1152xbf16>
    %20 = vector.shape_cast %19 : vector<1x32x1152xbf16> to vector<32x1152xbf16>
    %cst_14 = arith.constant dense<0.000000e+00> : vector<32x128xf32>
    %21 = tpu.matmul %20, %0, %cst_14 {dimension_numbers = #tpu.dot_dimension_numbers<[1], [0], [0], [1], [0, 0, 1, 1], [], []>} : vector<32x1152xbf16>, vector<1152x128xbf16>, vector<32x128xf32> -> vector<32x128xf32>
    %22 = vector.broadcast %1 : vector<1x128xf32> to vector<32x128xf32>
    %23 = arith.addf %21, %22 : vector<32x128xf32>
    %24 = arith.maximumf %18, %23 : vector<32x128xf32>
    %cst_15 = arith.constant 0.000000e+00 : f32
    %25 = vector.broadcast %cst_15 : f32 to vector<32x128xf32>
    %26 = arith.maximumf %24, %25 : vector<32x128xf32>
    %27 = arith.truncf %26 : vector<32x128xf32> to vector<32x128xbf16>
    %c0_16 = arith.constant 0 : index
    %c0_17 = arith.constant 0 : index
    %28 = vector.load %arg3[%c0_16, %c0_17] : memref<32x128xbf16, #tpu.memory_space<vmem>>, vector<32x128xbf16>
    tpu.vector_store %arg3[%c0_16, %c0_17], %27 {strides = array<i32>} : memref<32x128xbf16, #tpu.memory_space<vmem>>, vector<32x128xbf16>,
    return
  }
}

module attributes {stable_mosaic.version = 11 : i64} {
  func.func @stage_kernel(%arg0: memref<4x8x128xbf16, #tpu.memory_space<vmem>>, %arg1: memref<128x256xbf16, #tpu.memory_space<vmem>>, %arg2: memref<1x256xf32, #tpu.memory_space<vmem>>, %arg3: memref<8x256xbf16, #tpu.memory_space<vmem>>) attributes {dimension_semantics = [], scalar_prefetch = 0 : i64, scratch_operands = 0 : i64, tpu.core_type = #tpu.core_type<tc>} {
    %c0 = arith.constant 0 : index
    %c0_0 = arith.constant 0 : index
    %0 = vector.load %arg1[%c0, %c0_0] : memref<128x256xbf16, #tpu.memory_space<vmem>>, vector<128x256xbf16>
    %c0_1 = arith.constant 0 : index
    %c0_2 = arith.constant 0 : index
    %1 = vector.load %arg2[%c0_1, %c0_2] : memref<1x256xf32, #tpu.memory_space<vmem>>, vector<1x256xf32>
    %c0_3 = arith.constant 0 : index
    %c0_4 = arith.constant 0 : index
    %c0_5 = arith.constant 0 : index
    %2 = vector.load %arg0[%c0_3, %c0_4, %c0_5] : memref<4x8x128xbf16, #tpu.memory_space<vmem>>, vector<1x8x128xbf16>
    %3 = vector.shape_cast %2 : vector<1x8x128xbf16> to vector<8x128xbf16>
    %cst = arith.constant dense<0.000000e+00> : vector<8x256xf32>
    %4 = tpu.matmul %3, %0, %cst {dimension_numbers = #tpu.dot_dimension_numbers<[1], [0], [0], [1], [0, 0, 1, 1], [], []>} : vector<8x128xbf16>, vector<128x256xbf16>, vector<8x256xf32> -> vector<8x256xf32>
    %5 = vector.broadcast %1 : vector<1x256xf32> to vector<8x256xf32>
    %6 = arith.addf %4, %5 : vector<8x256xf32>
    %c1 = arith.constant 1 : index
    %c0_6 = arith.constant 0 : index
    %c0_7 = arith.constant 0 : index
    %7 = vector.load %arg0[%c1, %c0_6, %c0_7] : memref<4x8x128xbf16, #tpu.memory_space<vmem>>, vector<1x8x128xbf16>
    %8 = vector.shape_cast %7 : vector<1x8x128xbf16> to vector<8x128xbf16>
    %cst_8 = arith.constant dense<0.000000e+00> : vector<8x256xf32>
    %9 = tpu.matmul %8, %0, %cst_8 {dimension_numbers = #tpu.dot_dimension_numbers<[1], [0], [0], [1], [0, 0, 1, 1], [], []>} : vector<8x128xbf16>, vector<128x256xbf16>, vector<8x256xf32> -> vector<8x256xf32>
    %10 = vector.broadcast %1 : vector<1x256xf32> to vector<8x256xf32>
    %11 = arith.addf %9, %10 : vector<8x256xf32>
    %12 = arith.maximumf %6, %11 : vector<8x256xf32>
    %c2 = arith.constant 2 : index
    %c0_9 = arith.constant 0 : index
    %c0_10 = arith.constant 0 : index
    %13 = vector.load %arg0[%c2, %c0_9, %c0_10] : memref<4x8x128xbf16, #tpu.memory_space<vmem>>, vector<1x8x128xbf16>
    %14 = vector.shape_cast %13 : vector<1x8x128xbf16> to vector<8x128xbf16>
    %cst_11 = arith.constant dense<0.000000e+00> : vector<8x256xf32>
    %15 = tpu.matmul %14, %0, %cst_11 {dimension_numbers = #tpu.dot_dimension_numbers<[1], [0], [0], [1], [0, 0, 1, 1], [], []>} : vector<8x128xbf16>, vector<128x256xbf16>, vector<8x256xf32> -> vector<8x256xf32>
    %16 = vector.broadcast %1 : vector<1x256xf32> to vector<8x256xf32>
    %17 = arith.addf %15, %16 : vector<8x256xf32>
    %18 = arith.maximumf %12, %17 : vector<8x256xf32>
    %c3 = arith.constant 3 : index
    %c0_12 = arith.constant 0 : index
    %c0_13 = arith.constant 0 : index
    %19 = vector.load %arg0[%c3, %c0_12, %c0_13] : memref<4x8x128xbf16, #tpu.memory_space<vmem>>, vector<1x8x128xbf16>
    %20 = vector.shape_cast %19 : vector<1x8x128xbf16> to vector<8x128xbf16>
    %cst_14 = arith.constant dense<0.000000e+00> : vector<8x256xf32>
    %21 = tpu.matmul %20, %0, %cst_14 {dimension_numbers = #tpu.dot_dimension_numbers<[1], [0], [0], [1], [0, 0, 1, 1], [], []>} : vector<8x128xbf16>, vector<128x256xbf16>, vector<8x256xf32> -> vector<8x256xf32>
    %22 = vector.broadcast %1 : vector<1x256xf32> to vector<8x256xf32>
    %23 = arith.addf %21, %22 : vector<8x256xf32>
    %24 = arith.maximumf %18, %23 : vector<8x256xf32>
    %cst_15 = arith.constant 0.000000e+00 : f32
    %25 = vector.broadcast %cst_15 : f32 to vector<8x256xf32>
    %26 = arith.maximumf %24, %25 : vector<8x256xf32>
    %27 = arith.truncf %26 : vector<8x256xf32> to vector<8x256xbf16>
    %c0_16 = arith.constant 0 : index
    %c0_17 = arith.constant 0 : index
    %28 = vector.load %arg3[%c0_16, %c0_17] : memref<8x256xbf16, #tpu.memory_space<vmem>>, vector<8x256xbf16>
    tpu.vector_store %arg3[%c0_16, %c0_17], %27 {strides = array<i32>} : memref<8x256xbf16, #tpu.memory_space<vmem>>, vector<8x256xbf16>,
    return
  }
}

module attributes {stable_mosaic.version = 11 : i64} {
  func.func @stage_kernel(%arg0: memref<4x2x256xbf16, #tpu.memory_space<vmem>>, %arg1: memref<256x128xbf16, #tpu.memory_space<vmem>>, %arg2: memref<1x128xf32, #tpu.memory_space<vmem>>, %arg3: memref<2x128xf32, #tpu.memory_space<vmem>>) attributes {dimension_semantics = [], scalar_prefetch = 0 : i64, scratch_operands = 0 : i64, tpu.core_type = #tpu.core_type<tc>} {
    %c0 = arith.constant 0 : index
    %c0_0 = arith.constant 0 : index
    %0 = vector.load %arg1[%c0, %c0_0] : memref<256x128xbf16, #tpu.memory_space<vmem>>, vector<256x128xbf16>
    %c0_1 = arith.constant 0 : index
    %c0_2 = arith.constant 0 : index
    %1 = vector.load %arg2[%c0_1, %c0_2] : memref<1x128xf32, #tpu.memory_space<vmem>>, vector<1x128xf32>
    %c0_3 = arith.constant 0 : index
    %c0_4 = arith.constant 0 : index
    %c0_5 = arith.constant 0 : index
    %2 = vector.load %arg0[%c0_3, %c0_4, %c0_5] : memref<4x2x256xbf16, #tpu.memory_space<vmem>>, vector<1x2x256xbf16>
    %3 = vector.shape_cast %2 : vector<1x2x256xbf16> to vector<2x256xbf16>
    %cst = arith.constant dense<0.000000e+00> : vector<2x128xf32>
    %4 = tpu.matmul %3, %0, %cst {dimension_numbers = #tpu.dot_dimension_numbers<[1], [0], [0], [1], [0, 0, 1, 1], [], []>} : vector<2x256xbf16>, vector<256x128xbf16>, vector<2x128xf32> -> vector<2x128xf32>
    %5 = vector.broadcast %1 : vector<1x128xf32> to vector<2x128xf32>
    %6 = arith.addf %4, %5 : vector<2x128xf32>
    %c1 = arith.constant 1 : index
    %c0_6 = arith.constant 0 : index
    %c0_7 = arith.constant 0 : index
    %7 = vector.load %arg0[%c1, %c0_6, %c0_7] : memref<4x2x256xbf16, #tpu.memory_space<vmem>>, vector<1x2x256xbf16>
    %8 = vector.shape_cast %7 : vector<1x2x256xbf16> to vector<2x256xbf16>
    %cst_8 = arith.constant dense<0.000000e+00> : vector<2x128xf32>
    %9 = tpu.matmul %8, %0, %cst_8 {dimension_numbers = #tpu.dot_dimension_numbers<[1], [0], [0], [1], [0, 0, 1, 1], [], []>} : vector<2x256xbf16>, vector<256x128xbf16>, vector<2x128xf32> -> vector<2x128xf32>
    %10 = vector.broadcast %1 : vector<1x128xf32> to vector<2x128xf32>
    %11 = arith.addf %9, %10 : vector<2x128xf32>
    %12 = arith.maximumf %6, %11 : vector<2x128xf32>
    %c2 = arith.constant 2 : index
    %c0_9 = arith.constant 0 : index
    %c0_10 = arith.constant 0 : index
    %13 = vector.load %arg0[%c2, %c0_9, %c0_10] : memref<4x2x256xbf16, #tpu.memory_space<vmem>>, vector<1x2x256xbf16>
    %14 = vector.shape_cast %13 : vector<1x2x256xbf16> to vector<2x256xbf16>
    %cst_11 = arith.constant dense<0.000000e+00> : vector<2x128xf32>
    %15 = tpu.matmul %14, %0, %cst_11 {dimension_numbers = #tpu.dot_dimension_numbers<[1], [0], [0], [1], [0, 0, 1, 1], [], []>} : vector<2x256xbf16>, vector<256x128xbf16>, vector<2x128xf32> -> vector<2x128xf32>
    %16 = vector.broadcast %1 : vector<1x128xf32> to vector<2x128xf32>
    %17 = arith.addf %15, %16 : vector<2x128xf32>
    %18 = arith.maximumf %12, %17 : vector<2x128xf32>
    %c3 = arith.constant 3 : index
    %c0_12 = arith.constant 0 : index
    %c0_13 = arith.constant 0 : index
    %19 = vector.load %arg0[%c3, %c0_12, %c0_13] : memref<4x2x256xbf16, #tpu.memory_space<vmem>>, vector<1x2x256xbf16>
    %20 = vector.shape_cast %19 : vector<1x2x256xbf16> to vector<2x256xbf16>
    %cst_14 = arith.constant dense<0.000000e+00> : vector<2x128xf32>
    %21 = tpu.matmul %20, %0, %cst_14 {dimension_numbers = #tpu.dot_dimension_numbers<[1], [0], [0], [1], [0, 0, 1, 1], [], []>} : vector<2x256xbf16>, vector<256x128xbf16>, vector<2x128xf32> -> vector<2x128xf32>
    %22 = vector.broadcast %1 : vector<1x128xf32> to vector<2x128xf32>
    %23 = arith.addf %21, %22 : vector<2x128xf32>
    %24 = arith.maximumf %18, %23 : vector<2x128xf32>
    %cst_15 = arith.constant 0.000000e+00 : f32
    %25 = vector.broadcast %cst_15 : f32 to vector<2x128xf32>
    %26 = arith.maximumf %24, %25 : vector<2x128xf32>
    %c0_16 = arith.constant 0 : index
    %c0_17 = arith.constant 0 : index
    %27 = vector.load %arg3[%c0_16, %c0_17] : memref<2x128xf32, #tpu.memory_space<vmem>>, vector<2x128xf32>
    tpu.vector_store %arg3[%c0_16, %c0_17], %26 {strides = array<i32>} : memref<2x128xf32, #tpu.memory_space<vmem>>, vector<2x128xf32>,
    return
  }
}

</mosaic_0001>

<bundles_post_ra>
// kernel: mnist_model_forward.4
= control target key start
LH: loop header
LB: loop body
LE: loop exit
PB: predicated region body
PF: predicated region fallthrough
CT: control target
= control target key end

     0   :  { %vm131_vm0 = vcmask 1040384   ;;  %v1293_v1 = vmov 0   ;;  %vm106_vm1 = vcmask 400384   ;;  %s1598_s1 = inlined_call_operand.vmem [shape: bf16[49,128], index: 1, kind: input, shape index: {}]   ;;  %s1599_s0 = inlined_call_operand.vmem [shape: bf16[4,128,49], index: 0, kind: input, shape index: {}]   ;;  %s1600_s2 = inlined_call_operand.vmem [shape: f32[1,128], index: 2, kind: input, shape index: {}]   ;;  %s1601_s3 = inlined_call_operand.vmem [shape: bf16[128,128], index: 3, kind: output, shape index: {}]  }
   0x1   :  { %v1257_v0 = vld [vmem:[%s1598_s1 + $0x18] ss:$0 sps:$4 sm:$0x11]   ;;  %v133_v2 = vsel %vm131_vm0, 65535, %v1293_v1  ;;  %v1258_v4 = vld [vmem:[%s1598_s1 + $0x10] sm:$0xff]   ;;  %v1261_v5 = vld [vmem:[%s1599_s0] sm:$0xff]  }
   0x2   :  { %v135_v3 = vand.u32 %v1257_v0, %v133_v2  ;;  %v1262_v6 = vld [vmem:[%s1599_s0 + $0x40] sm:$0xff]   ;;  %v1259_v7 = vld [vmem:[%s1598_s1 + $0x8] sm:$0xff]   ;;  %1168 = vmatprep.mubr.msk.bf16.mxu0 %vm106_vm1, %v1261_v5  ;;  %v1265_v11 = vld [vmem:[%s1599_s0 + $0x10] sm:$0xff]  }
   0x3   :  { %1192 = vmatprep.mubr.msk.bf16.mxu1 %vm106_vm1, %v1262_v6  ;;  %v1260_v8 = vld [vmem:[%s1598_s1] sm:$0xff]   ;;  %v1263_v9 = vld [vmem:[%s1599_s0 + $0x8] sm:$0xff]   ;;  %v1266_v12 = vld [vmem:[%s1599_s0 + $0x50] sm:$0xff]  }
   0x4   :  { %1160 = vmatprep.subr.bf16.mxu0 %v135_v3  ;;  %1184 = vmatprep.subr.bf16.mxu1 %v135_v3  ;;  %v1264_v10 = vld [vmem:[%s1599_s0 + $0x48] sm:$0xff]   ;;  %v1267_v13 = vld [vmem:[%s1599_s0 + $0x18] sm:$0xff]   ;;  %v1269_v15 = vld [vmem:[%s1599_s0 + $0x20] sm:$0xff]  }
   0x5   :  { %1161 = vmatpush3.bf16.msra.mxu0 %v135_v3  ;;  %1185 = vmatpush3.bf16.msra.mxu1 %v135_v3  ;;  %v1268_v14 = vld [vmem:[%s1599_s0 + $0x58] sm:$0xff]   ;;  %v1270_v16 = vld [vmem:[%s1599_s0 + $0x60] sm:$0xff]   ;;  %v1271_v17 = vld [vmem:[%s1599_s0 + $0x28] sm:$0xff]  }
   0x6   :  { %1162 = vmatprep.subr.bf16.mxu0 %v1258_v4  ;;  %1186 = vmatprep.subr.bf16.mxu1 %v1258_v4  ;;  %v1272_v18 = vld [vmem:[%s1599_s0 + $0x68] sm:$0xff]   ;;  %v1273_v19 = vld [vmem:[%s1599_s0 + $0x30] sm:$0xff]   ;;  %v1275_v21 = vld [vmem:[%s1599_s0 + $0x38] sm:$0xff]  }
   0x7   :  { %v1274_v20 = vld [vmem:[%s1599_s0 + $0x70] sm:$0xff]   ;;  %v1276_v22 = vld [vmem:[%s1599_s0 + $0x78] sm:$0xff]   ;;  %v1277_v23 = vld [vmem:[%s1599_s0 + $0x80] sm:$0xff]  }
   0x8   :  { %v1278_v24 = vld [vmem:[%s1599_s0 + $0xc0] sm:$0xff]   ;;  %v1279_v25 = vld [vmem:[%s1599_s0 + $0x88] sm:$0xff]   ;;  %v1281_v27 = vld [vmem:[%s1599_s0 + $0x90] sm:$0xff]  }
   0x9   :  { %1163 = vmatpush3.bf16.msra.mxu0 %v1258_v4  ;;  %1187 = vmatpush3.bf16.msra.mxu1 %v1258_v4  ;;  %v1280_v26 = vld [vmem:[%s1599_s0 + $0xc8] sm:$0xff]   ;;  %v1282_v28 = vld [vmem:[%s1599_s0 + $0xd0] sm:$0xff]   ;;  %v1283_v29 = vld [vmem:[%s1599_s0 + $0x98] sm:$0xff]  }
   0xa   :  { %1164 = vmatprep.subr.bf16.mxu0 %v1259_v7  ;;  %1188 = vmatprep.subr.bf16.mxu1 %v1259_v7  ;;  %v1284_v30 = vld [vmem:[%s1599_s0 + $0xd8] sm:$0xff]   ;;  %v1285_v31 = vld [vmem:[%s1599_s0 + $0xa0] sm:$0xff]   ;;  %v1287_v33 = vld [vmem:[%s1599_s0 + $0xa8] sm:$0xff]  }
   0xb   :  { %v1286_v32 = vld [vmem:[%s1599_s0 + $0xe0] sm:$0xff]   ;;  %v1288_v34 = vld [vmem:[%s1599_s0 + $0xe8] sm:$0xff]   ;;  %v1289_v35 = vld [vmem:[%s1599_s0 + $0xb0] sm:$0xff]  }
   0xc   :  { %v1290_v36 = vld [vmem:[%s1599_s0 + $0xf0] sm:$0xff]   ;;  %v1291_v37 = vld [vmem:[%s1599_s0 + $0xb8] sm:$0xff]   ;;  %v1473_v1 = vld [vmem:[%s1600_s2] ss:$0 sm:$0xff] }
   0xd   :  { %1165 = vmatpush3.bf16.msra.mxu0 %v1259_v7  ;;  %1189 = vmatpush3.bf16.msra.mxu1 %v1259_v7  ;;  %v1292_v38 = vld [vmem:[%s1599_s0 + $0xf8] sm:$0xff]  }
   0xe   :  { %1166 = vmatprep.subr.bf16.mxu0 %v1260_v8  ;;  %1190 = vmatprep.subr.bf16.mxu1 %v1260_v8 }
  0x11   :  { %1167 = vmatpush3.bf16.msra.mxu0 %v1260_v8  ;;  %1191 = vmatpush3.bf16.msra.mxu1 %v1260_v8 }
  0x12   :  { %1208 = vmatprep.subr.bf16.mxu0 %v135_v3  ;;  %1232 = vmatprep.subr.bf16.mxu1 %v135_v3 }
  0x14   :  { %1169 = vmatmul.mubr.msk.bf16.vlgmr.msra.gmra.mxu0 %vm106_vm1, %v1263_v9  ;;  %1193 = vmatmul.mubr.msk.bf16.vlgmr.msra.gmra.mxu1 %vm106_vm1, %v1264_v10 }
  0x15   :  { %1209 = vmatpush3.bf16.msra.mxu0 %v135_v3  ;;  %1233 = vmatpush3.bf16.msra.mxu1 %v135_v3 }
  0x16   :  { %1172 = vmatprep.mubr.msk.bf16.mxu0 %vm106_vm1, %v1265_v11  ;;  %1196 = vmatprep.mubr.msk.bf16.mxu1 %vm106_vm1, %v1266_v12 }
  0x17   :  { %1210 = vmatprep.subr.bf16.mxu0 %v1258_v4  ;;  %1234 = vmatprep.subr.bf16.mxu1 %v1258_v4 }
  0x19   :  { %1211 = vmatpush3.bf16.msra.mxu0 %v1258_v4  ;;  %1235 = vmatpush3.bf16.msra.mxu1 %v1258_v4 }
  0x1a   :  { %1212 = vmatprep.subr.bf16.mxu0 %v1259_v7  ;;  %1236 = vmatprep.subr.bf16.mxu1 %v1259_v7 }
  0x1c   :  { %1173 = vmatmul.mubr.msk.bf16.gmra.mxu0 %vm106_vm1, %v1267_v13  ;;  %1197 = vmatmul.mubr.msk.bf16.gmra.mxu1 %vm106_vm1, %v1268_v14 }
  0x1d   :  { %1176 = vmatprep.mubr.msk.bf16.mxu0 %vm106_vm1, %v1269_v15  ;;  %1200 = vmatprep.mubr.msk.bf16.mxu1 %vm106_vm1, %v1270_v16 }
  0x1e   :  { %1213 = vmatpush3.bf16.msra.mxu0 %v1259_v7  ;;  %1237 = vmatpush3.bf16.msra.mxu1 %v1259_v7 }
  0x1f   :  { %1214 = vmatprep.subr.bf16.mxu0 %v1260_v8  ;;  %1238 = vmatprep.subr.bf16.mxu1 %v1260_v8 }
  0x22   :  { %1215 = vmatpush3.bf16.msra.mxu0 %v1260_v8  ;;  %1239 = vmatpush3.bf16.msra.mxu1 %v1260_v8 }
  0x24   :  { %1177 = vmatmul.mubr.msk.bf16.gmra.mxu0 %vm106_vm1, %v1271_v17  ;;  %1201 = vmatmul.mubr.msk.bf16.gmra.mxu1 %vm106_vm1, %v1272_v18 }
  0x25   :  { %1180 = vmatprep.mubr.msk.bf16.mxu0 %vm106_vm1, %v1273_v19  ;;  %1204 = vmatprep.mubr.msk.bf16.mxu1 %vm106_vm1, %v1274_v20 }
  0x2c   :  { %1181 = vmatmul.mubr.msk.bf16.gmra.mxu0 %vm106_vm1, %v1275_v21  ;;  %1205 = vmatmul.mubr.msk.bf16.gmra.mxu1 %vm106_vm1, %v1276_v22 }
  0x2d   :  { %1216 = vmatprep.mubr.msk.bf16.mxu0 %vm106_vm1, %v1277_v23  ;;  %1240 = vmatprep.mubr.msk.bf16.mxu1 %vm106_vm1, %v1278_v24 }
  0x34   :  { %1217 = vmatmul.mubr.msk.bf16.vlgmr.msra.gmra.mxu0 %vm106_vm1, %v1279_v25  ;;  %1241 = vmatmul.mubr.msk.bf16.vlgmr.msra.gmra.mxu1 %vm106_vm1, %v1280_v26 }
  0x35   :  { %1220 = vmatprep.mubr.msk.bf16.mxu0 %vm106_vm1, %v1281_v27  ;;  %1244 = vmatprep.mubr.msk.bf16.mxu1 %vm106_vm1, %v1282_v28 }
  0x3c   :  { %1221 = vmatmul.mubr.msk.bf16.gmra.mxu0 %vm106_vm1, %v1283_v29  ;;  %1245 = vmatmul.mubr.msk.bf16.gmra.mxu1 %vm106_vm1, %v1284_v30 }
  0x3d   :  { %1224 = vmatprep.mubr.msk.bf16.mxu0 %vm106_vm1, %v1285_v31  ;;  %1248 = vmatprep.mubr.msk.bf16.mxu1 %vm106_vm1, %v1286_v32 }
  0x44   :  { %1225 = vmatmul.mubr.msk.bf16.gmra.mxu0 %vm106_vm1, %v1287_v33  ;;  %1249 = vmatmul.mubr.msk.bf16.gmra.mxu1 %vm106_vm1, %v1288_v34 }
  0x45   :  { %1228 = vmatprep.mubr.msk.bf16.mxu0 %vm106_vm1, %v1289_v35  ;;  %1252 = vmatprep.mubr.msk.bf16.mxu1 %vm106_vm1, %v1290_v36 }
  0x4c   :  { %1229 = vmatmul.mubr.msk.bf16.gmra.mxu0 %vm106_vm1, %v1291_v37  ;;  %1253 = vmatmul.mubr.msk.bf16.gmra.mxu1 %vm106_vm1, %v1292_v38 }
  0xd4   :  { %v1170_v39 = vpop.f32.mrf.mxu0  ;;  %v1194_v40 = vpop.f32.mrf.mxu1 }
  0xd5   :  { %v180_v6 = vadd.f32 %v1170_v39, %v1473_v1  ;;  %v358_v7 = vadd.f32 %v1194_v40, %v1473_v1 }
  0xd6   :  { %v171_v41 = vpop.f32.mrf.mxu0  ;;  %v349_v42 = vpop.f32.mrf.mxu1 }
  0xd7   :  { %v172_v8 = vadd.f32 %v1473_v1, %v171_v41  ;;  %v350_v9 = vadd.f32 %v1473_v1, %v349_v42  ;;  %v414_v18 = vmax.f32 %v180_v6, %v358_v7 }
  0xd8   :  { %v1171_v43 = vpop.f32.mrf.mxu0  ;;  %v1195_v44 = vpop.f32.mrf.mxu1 }
  0xd9   :  { %v183_v10 = vadd.f32 %v1171_v43, %v1473_v1  ;;  %v361_v11 = vadd.f32 %v1195_v44, %v1473_v1  ;;  %v412_v20 = vmax.f32 %v172_v8, %v350_v9 }
  0xda   :  { %v174_v45 = vpop.f32.mrf.mxu0  ;;  %v352_v46 = vpop.f32.mrf.mxu1 }
  0xdb   :  { %v175_v12 = vadd.f32 %v1473_v1, %v174_v45  ;;  %v353_v13 = vadd.f32 %v1473_v1, %v352_v46  ;;  %v415_v21 = vmax.f32 %v183_v10, %v361_v11 }
  0xdc   :  { %v1174_v47 = vpop.f32.mrf.mxu0  ;;  %v1198_v48 = vpop.f32.mrf.mxu1 }
  0xdd   :  { %v413_v22 = vmax.f32 %v175_v12, %v353_v13  ;;  %v196_v25 = vadd.f32 %v1174_v47, %v1473_v1  ;;  %v374_v29 = vadd.f32 %v1198_v48, %v1473_v1 }
  0xde   :  { %v187_v49 = vpop.f32.mrf.mxu0  ;;  %v365_v50 = vpop.f32.mrf.mxu1 }
  0xdf   :  { %v188_v30 = vadd.f32 %v1473_v1, %v187_v49  ;;  %v366_v31 = vadd.f32 %v1473_v1, %v365_v50  ;;  %v418_v49 = vmax.f32 %v196_v25, %v374_v29 }
  0xe0   :  { %v1175_v51 = vpop.f32.mrf.mxu0  ;;  %v1199_v52 = vpop.f32.mrf.mxu1 }
  0xe1   :  { %v199_v32 = vadd.f32 %v1175_v51, %v1473_v1  ;;  %v377_v35 = vadd.f32 %v1199_v52, %v1473_v1  ;;  %v416_v6 = vmax.f32 %v188_v30, %v366_v31 }
  0xe2   :  { %v190_v53 = vpop.f32.mrf.mxu0  ;;  %v368_v54 = vpop.f32.mrf.mxu1 }
  0xe3   :  { %v191_v36 = vadd.f32 %v1473_v1, %v190_v53  ;;  %v369_v39 = vadd.f32 %v1473_v1, %v368_v54  ;;  %v419_v7 = vmax.f32 %v199_v32, %v377_v35 }
  0xe4   :  { %v1178_v55 = vpop.f32.mrf.mxu0  ;;  %v1202_v56 = vpop.f32.mrf.mxu1 }
  0xe5   :  { %v1508_v40 = vadd.f32 %v1178_v55, %v1473_v1  ;;  %v1511_v41 = vadd.f32 %v1202_v56, %v1473_v1  ;;  %v417_v8 = vmax.f32 %v191_v36, %v369_v39 }
  0xe6   :  { %v1454_v57 = vpop.f32.mrf.mxu0  ;;  %v1456_v58 = vpop.f32.mrf.mxu1 }
  0xe7   :  { %v422_v9 = vmax.f32 %v1508_v40, %v1511_v41 }
  0xe8   :  { %v1458_v59 = vpop.f32.mrf.mxu0  ;;  %v1460_v60 = vpop.f32.mrf.mxu1 }
  0xe9   :  { %v393_v29 = vadd.f32 %v1460_v60, %v1473_v1 }
  0xea   :  { %v1462_v61 = vpop.f32.mrf.mxu0  ;;  %v1464_v62 = vpop.f32.mrf.mxu1 }
  0xeb   :  { %v385_v32 = vadd.f32 %v1473_v1, %v1464_v62 }
  0xec   :  { %v1466_v63 = vpop.f32.mrf.mxu0  ;;  %v1468_v0 = vpop.f32.mrf.mxu1 }
  0xee   :  { %v1475_v2 = vpop.f32.mrf.mxu0  ;;  %v1477_v3 = vpop.f32.mrf.mxu1 }
  0xf0   :  { %v1479_v4 = vpop.f32.mrf.mxu0  ;;  %v1481_v5 = vpop.f32.mrf.mxu1 }
  0xf2   :  { %v1491_v14 = vpop.f32.mrf.mxu0  ;;  %v1493_v15 = vpop.f32.mrf.mxu1 }
  0xf4   :  { %v1218_v16 = vpop.f32.mrf.mxu0  ;;  %v1242_v17 = vpop.f32.mrf.mxu1 }
  0xf5   :  { %v552_v19 = vadd.f32 %v1218_v16, %v1473_v1  ;;  %v746_v27 = vadd.f32 %v1242_v17, %v1473_v1 }
  0xf6   :  { %v543_v23 = vpop.f32.mrf.mxu0  ;;  %v737_v24 = vpop.f32.mrf.mxu1 }
  0xf7   :  { %v608_v26 = vmax.f32 %v414_v18, %v552_v19  ;;  %v544_v28 = vadd.f32 %v1473_v1, %v543_v23  ;;  %v738_v42 = vadd.f32 %v1473_v1, %v737_v24  ;;  %v204_v18 = vadd.f32 %v1473_v1, %v1454_v57 }
  0xf8   :  { %v1219_v33 = vpop.f32.mrf.mxu0  ;;  %v1243_v34 = vpop.f32.mrf.mxu1  ;;  %v382_v19 = vadd.f32 %v1473_v1, %v1456_v58  ;;  %v1532_v57 = vadd.f32 %v1473_v1, %v1462_v61  ;;  %v228_v61 = vadd.f32 %v1466_v63, %v1473_v1  ;;  %v220_v63 = vadd.f32 %v1473_v1, %v1475_v2 }
  0xf9   :  { %v606_v37 = vmax.f32 %v412_v20, %v544_v28  ;;  %v555_v38 = vadd.f32 %v1219_v33, %v1473_v1  ;;  %v802_v45 = vmax.f32 %v608_v26, %v746_v27  ;;  %v749_v47 = vadd.f32 %v1243_v34, %v1473_v1 }
  0xfa   :  { %v546_v43 = vpop.f32.mrf.mxu0  ;;  %v740_v44 = vpop.f32.mrf.mxu1  ;;  %v215_v28 = vadd.f32 %v1458_v59, %v1473_v1  ;;  %v421_v2 = vmax.f32 %v1532_v57, %v385_v32 }
  0xfb   :  { %v609_v46 = vmax.f32 %v415_v21, %v555_v38  ;;  %v547_v48 = vadd.f32 %v1473_v1, %v546_v43  ;;  %v800_v50 = vmax.f32 %v606_v37, %v738_v42  ;;  %v741_v55 = vadd.f32 %v1473_v1, %v740_v44 }
  0xfc   :  { %v1222_v51 = vpop.f32.mrf.mxu0  ;;  %v1246_v52 = vpop.f32.mrf.mxu1  ;;  %v818_v12 = vmax.f32 %v802_v45, 0.0  ;;  %v406_v42 = vadd.f32 %v1468_v0, %v1473_v1 }
  0xfd   :  { %v803_v53 = vmax.f32 %v609_v46, %v749_v47  ;;  %v607_v54 = vmax.f32 %v413_v22, %v547_v48  ;;  %v568_v56 = vadd.f32 %v1222_v51, %v1473_v1  ;;  %v762_v21 = vadd.f32 %v1246_v52, %v1473_v1 }
  0xfe   :  { %v559_v10 = vpop.f32.mrf.mxu0  ;;  %v753_v11 = vpop.f32.mrf.mxu1  ;;  %v816_v24 = vmax.f32 %v800_v50, 0.0  ;;  %v398_v47 = vadd.f32 %v1473_v1, %v1477_v3  ;;  %v420_v51 = vmax.f32 %v204_v18, %v382_v19  ;;  %v423_v52 = vmax.f32 %v215_v28, %v393_v29 }
  0xff   :  { %v819_v13 = vmax.f32 %v803_v53, 0.0  ;;  %v801_v16 = vmax.f32 %v607_v54, %v741_v55  ;;  %v560_v17 = vadd.f32 %v1473_v1, %v559_v10  ;;  %v612_v20 = vmax.f32 %v418_v49, %v568_v56 }
 0x100   :  { %v1223_v22 = vpop.f32.mrf.mxu0  ;;  %v1247_v23 = vpop.f32.mrf.mxu1  ;;  %v754_v59 = vadd.f32 %v1473_v1, %v753_v11  ;;  %v231_v19 = vadd.f32 %v1479_v4, %v1473_v1 }
 0x101   :  { %v1073_v25 = vpack.c.bf16 %v819_v13, %v818_v12  ;;  %v817_v26 = vmax.f32 %v801_v16, 0.0  ;;  %v610_v27 = vmax.f32 %v416_v6, %v560_v17  ;;  %v571_v58 = vadd.f32 %v1223_v22, %v1473_v1 }
 0x102   :  { %v562_v30 = vpop.f32.mrf.mxu0  ;;  %v756_v31 = vpop.f32.mrf.mxu1  ;;  %v806_v34 = vmax.f32 %v612_v20, %v762_v21  ;;  %v765_v36 = vadd.f32 %v1247_v23, %v1473_v1  ;;  %v424_v13 = vmax.f32 %v220_v63, %v398_v47  ;;  %v409_v20 = vadd.f32 %v1481_v5, %v1473_v1 }
 0x103   :  { %1105 = vst [vmem:[%s1601_s3 + $0x8] sm:$0xff] %v1073_v25   ;;  %v1068_v33 = vpack.c.bf16 %v817_v26, %v816_v24  ;;  %v563_v60 = vadd.f32 %v1473_v1, %v562_v30  ;;  %v613_v35 = vmax.f32 %v419_v7, %v571_v58  ;;  %v804_v62 = vmax.f32 %v610_v27, %v754_v59 }
 0x104   :  { %v1226_v37 = vpop.f32.mrf.mxu0  ;;  %v1250_v38 = vpop.f32.mrf.mxu1  ;;  %v757_v40 = vadd.f32 %v1473_v1, %v756_v31  ;;  %v822_v53 = vmax.f32 %v806_v34, 0.0  ;;  %v223_v25 = vadd.f32 %v1473_v1, %v1491_v14  ;;  %v401_v26 = vadd.f32 %v1473_v1, %v1493_v15 }
 0x105   :  { %1069 = vst [vmem:[%s1601_s3] sm:$0xff] %v1068_v33   ;;  %v611_v39 = vmax.f32 %v417_v8, %v563_v60  ;;  %v584_v41 = vadd.f32 %v1226_v37, %v1473_v1  ;;  %v807_v43 = vmax.f32 %v613_v35, %v765_v36  ;;  %v778_v44 = vadd.f32 %v1250_v38, %v1473_v1 }
 0x106   :  { %v575_v45 = vpop.f32.mrf.mxu0  ;;  %v769_v46 = vpop.f32.mrf.mxu1  ;;  %v820_v56 = vmax.f32 %v804_v62, 0.0  ;;  %v426_v8 = vmax.f32 %v228_v61, %v406_v42  ;;  %v427_v61 = vmax.f32 %v231_v19, %v409_v20  ;;  %v425_v37 = vmax.f32 %v223_v25, %v401_v26 }
 0x107   :  { %v805_v48 = vmax.f32 %v611_v39, %v757_v40  ;;  %v616_v49 = vmax.f32 %v422_v9, %v584_v41  ;;  %v576_v50 = vadd.f32 %v1473_v1, %v575_v45  ;;  %v823_v54 = vmax.f32 %v807_v43, 0.0 }
 0x108   :  { %v1227_v0 = vpop.f32.mrf.mxu0  ;;  %v1251_v55 = vpop.f32.mrf.mxu1  ;;  %v770_v21 = vadd.f32 %v1473_v1, %v769_v46 }
 0x109   :  { %v821_v6 = vmax.f32 %v805_v48, 0.0  ;;  %v587_v7 = vadd.f32 %v1227_v0, %v1473_v1  ;;  %v1083_v10 = vpack.c.bf16 %v823_v54, %v822_v53  ;;  %v810_v11 = vmax.f32 %v616_v49, %v778_v44 }
 0x10a   :  { %v614_v3 = vmax.f32 %v420_v51, %v576_v50  ;;  %v578_v12 = vpop.f32.mrf.mxu0  ;;  %v772_v9 = vpop.f32.mrf.mxu1  ;;  %v781_v18 = vadd.f32 %v1251_v55, %v1473_v1 }
 0x10b   :  { %v1078_v16 = vpack.c.bf16 %v821_v6, %v820_v56  ;;  %v617_v17 = vmax.f32 %v423_v52, %v587_v7  ;;  %1107 = vst [vmem:[%s1601_s3 + $0x18] sm:$0xff] %v1083_v10   ;;  %v579_v22 = vadd.f32 %v1473_v1, %v578_v12  ;;  %v826_v27 = vmax.f32 %v810_v11, 0.0 }
 0x10c   :  { %v1230_v23 = vpop.f32.mrf.mxu0  ;;  %v1254_v24 = vpop.f32.mrf.mxu1  ;;  %v808_v28 = vmax.f32 %v614_v3, %v770_v21  ;;  %v773_v57 = vadd.f32 %v1473_v1, %v772_v9 }
 0x10d   :  { %1106 = vst [vmem:[%s1601_s3 + $0x10] sm:$0xff] %v1078_v16   ;;  %v811_v4 = vmax.f32 %v617_v17, %v781_v18  ;;  %v600_v5 = vadd.f32 %v1230_v23, %v1473_v1  ;;  %v615_v29 = vmax.f32 %v421_v2, %v579_v22  ;;  %v794_v14 = vadd.f32 %v1254_v24, %v1473_v1 }
 0x10e   :  { %v591_v58 = vpop.f32.mrf.mxu0  ;;  %v785_v30 = vpop.f32.mrf.mxu1  ;;  %v824_v38 = vmax.f32 %v808_v28, 0.0 }
 0x10f   :  { %v827_v31 = vmax.f32 %v811_v4, 0.0  ;;  %v620_v32 = vmax.f32 %v426_v8, %v600_v5  ;;  %v592_v15 = vadd.f32 %v1473_v1, %v591_v58  ;;  %v809_v33 = vmax.f32 %v615_v29, %v773_v57 }
 0x110   :  { %v1231_v59 = vpop.f32.mrf.mxu0  ;;  %v1255_v60 = vpop.f32.mrf.mxu1  ;;  %v786_v39 = vadd.f32 %v1473_v1, %v785_v30 }
 0x111   :  { %v1093_v34 = vpack.c.bf16 %v827_v31, %v826_v27  ;;  %v618_v35 = vmax.f32 %v424_v13, %v592_v15  ;;  %v603_v36 = vadd.f32 %v1231_v59, %v1473_v1  ;;  %v825_v62 = vmax.f32 %v809_v33, 0.0 }
 0x112   :  { %v594_v40 = vpop.f32.mrf.mxu0  ;;  %v788_v41 = vpop.f32.mrf.mxu1  ;;  %v814_v42 = vmax.f32 %v620_v32, %v794_v14  ;;  %v797_v43 = vadd.f32 %v1255_v60, %v1473_v1 }
 0x113   :  { %1109 = vst [vmem:[%s1601_s3 + $0x28] sm:$0xff] %v1093_v34   ;;  %v621_v63 = vmax.f32 %v427_v61, %v603_v36  ;;  %v595_v44 = vadd.f32 %v1473_v1, %v594_v40  ;;  %v1088_v45 = vpack.c.bf16 %v825_v62, %v824_v38  ;;  %v812_v46 = vmax.f32 %v618_v35, %v786_v39 }
 0x114   :  { %v789_v49 = vadd.f32 %v1473_v1, %v788_v41  ;;  %v830_v50 = vmax.f32 %v814_v42, 0.0 }
 0x115   :  { %v815_v47 = vmax.f32 %v621_v63, %v797_v43  ;;  %v619_v48 = vmax.f32 %v425_v37, %v595_v44  ;;  %1108 = vst [vmem:[%s1601_s3 + $0x20] sm:$0xff] %v1088_v45   ;;  %v828_v53 = vmax.f32 %v812_v46, 0.0 }
 0x117   :  { %v831_v51 = vmax.f32 %v815_v47, 0.0  ;;  %v813_v52 = vmax.f32 %v619_v48, %v789_v49 }
 0x119   :  { %v1103_v54 = vpack.c.bf16 %v831_v51, %v830_v50  ;;  %v829_v0 = vmax.f32 %v813_v52, 0.0 }
 0x11b   :  { %1111 = vst [vmem:[%s1601_s3 + $0x38] sm:$0xff] %v1103_v54   ;;  %v1098_v55 = vpack.c.bf16 %v829_v0, %v828_v53 }
 0x11d   :  { %1110 = vst [vmem:[%s1601_s3 + $0x30] sm:$0xff] %v1098_v55  }

// kernel: mnist_model_forward.6
= control target key start
LH: loop header
LB: loop body
LE: loop exit
PB: predicated region body
PF: predicated region fallthrough
CT: control target
= control target key end

     0   :  { %v361_v1 = vmov 0   ;;  %v34_v29 = vlaneseq  ;;  %s448_s1 = inlined_call_operand.vmem [shape: bf16[128,256], index: 1, kind: input, shape index: {}]   ;;  %s449_s0 = inlined_call_operand.vmem [shape: bf16[4,8,128], index: 0, kind: input, shape index: {}]   ;;  %s450_s2 = inlined_call_operand.vmem [shape: f32[1,256], index: 2, kind: input, shape index: {}]   ;;  %s451_s3 = inlined_call_operand.vmem [shape: bf16[8,256], index: 3, kind: output, shape index: {}]  }
   0x1   :  { %v337_v0 = vld [vmem:[%s448_s1 + $0x74] ss:$8 sps:$4 sm:$0xff]   ;;  %156 = vmatprep.mubr.bf16.mxu0 %v361_v1  ;;  %199 = vmatprep.mubr.bf16.mxu1 %v361_v1  ;;  %v339_v2 = vld [vmem:[%s448_s1 + $0x70] ss:$8 sps:$4 sm:$0xff]   ;;  %v340_v3 = vld [vmem:[%s448_s1 + $0x64] ss:$8 sps:$4 sm:$0xff]  }
   0x2   :  { %124 = vmatprep.subr.bf16.mxu0 %v337_v0  ;;  %167 = vmatprep.subr.bf16.mxu1 %v337_v0  ;;  %v342_v4 = vld [vmem:[%s448_s1 + $0x60] ss:$8 sps:$4 sm:$0xff]   ;;  %v343_v5 = vld [vmem:[%s448_s1 + $0x54] ss:$8 sps:$4 sm:$0xff]   ;;  %v345_v6 = vld [vmem:[%s448_s1 + $0x50] ss:$8 sps:$4 sm:$0xff]  }
   0x3   :  { %125 = vmatpush1.bf16.msra.mxu0 %v339_v2  ;;  %168 = vmatpush1.bf16.msra.mxu1 %v339_v2  ;;  %v346_v7 = vld [vmem:[%s448_s1 + $0x44] ss:$8 sps:$4 sm:$0xff]   ;;  %v348_v8 = vld [vmem:[%s448_s1 + $0x40] ss:$8 sps:$4 sm:$0xff]   ;;  %v349_v9 = vld [vmem:[%s448_s1 + $0x34] ss:$8 sps:$4 sm:$0xff]  }
   0x4   :  { %126 = vmatprep.subr.bf16.mxu0 %v340_v3  ;;  %169 = vmatprep.subr.bf16.mxu1 %v340_v3  ;;  %v351_v10 = vld [vmem:[%s448_s1 + $0x30] ss:$8 sps:$4 sm:$0xff]   ;;  %v352_v11 = vld [vmem:[%s448_s1 + $0x24] ss:$8 sps:$4 sm:$0xff]   ;;  %v354_v12 = vld [vmem:[%s448_s1 + $0x20] ss:$8 sps:$4 sm:$0xff]  }
   0x5   :  { %v355_v13 = vld [vmem:[%s448_s1 + $0x14] ss:$8 sps:$4 sm:$0xff]   ;;  %v357_v14 = vld [vmem:[%s448_s1 + $0x10] ss:$8 sps:$4 sm:$0xff]   ;;  %v358_v15 = vld [vmem:[%s448_s1 + $0x4] ss:$8 sps:$4 sm:$0xff]  }
   0x6   :  { %v360_v16 = vld [vmem:[%s448_s1] ss:$8 sps:$4 sm:$0xff]   ;;  %v331_v18 = vld [vmem:[%s449_s0 + $0x4] sm:$0xf]  ;;  %v333_v20 = vld [vmem:[%s449_s0 + $0xc] sm:$0xf] }
   0x7   :  { %127 = vmatpush1.bf16.msra.mxu0 %v342_v4  ;;  %170 = vmatpush1.bf16.msra.mxu1 %v342_v4  ;;  %v32_v17 = vld [vmem:[%s449_s0] sm:$0xf]  ;;  %v332_v19 = vld [vmem:[%s449_s0 + $0x8] sm:$0xf]  ;;  %v35_v30 = vshrl.u32 %v34_v29, 7 }
   0x8   :  { %128 = vmatprep.subr.bf16.mxu0 %v343_v5  ;;  %171 = vmatprep.subr.bf16.mxu1 %v343_v5  ;;  %v31_v32 = vld [vmem:[%s450_s2] sm:$0x3] }
   0x9   :  { %v36_v31 = vsub.s32 0, %v35_v30  ;;  %v40_v33 = vsub.s32 1, %v35_v30 }
   0xb   :  { %129 = vmatpush1.bf16.msra.mxu0 %v345_v6  ;;  %172 = vmatpush1.bf16.msra.mxu1 %v345_v6  ;;  %v37_v34 = vrot.slane %v31_v32, %v36_v31  ;;  %v41_v35 = vrot.slane %v31_v32, %v40_v33 }
   0xc   :  { %130 = vmatprep.subr.bf16.mxu0 %v346_v7  ;;  %173 = vmatprep.subr.bf16.mxu1 %v346_v7 }
   0xf   :  { %131 = vmatpush1.bf16.msra.mxu0 %v348_v8  ;;  %174 = vmatpush1.bf16.msra.mxu1 %v348_v8 }
  0x10   :  { %132 = vmatprep.subr.bf16.mxu0 %v349_v9  ;;  %175 = vmatprep.subr.bf16.mxu1 %v349_v9 }
  0x13   :  { %133 = vmatpush1.bf16.msra.mxu0 %v351_v10  ;;  %176 = vmatpush1.bf16.msra.mxu1 %v351_v10 }
  0x14   :  { %134 = vmatprep.subr.bf16.mxu0 %v352_v11  ;;  %177 = vmatprep.subr.bf16.mxu1 %v352_v11 }
  0x17   :  { %135 = vmatpush1.bf16.msra.mxu0 %v354_v12  ;;  %178 = vmatpush1.bf16.msra.mxu1 %v354_v12 }
  0x18   :  { %136 = vmatprep.subr.bf16.mxu0 %v355_v13  ;;  %179 = vmatprep.subr.bf16.mxu1 %v355_v13 }
  0x1b   :  { %137 = vmatpush1.bf16.msra.mxu0 %v357_v14  ;;  %180 = vmatpush1.bf16.msra.mxu1 %v357_v14 }
  0x1c   :  { %138 = vmatprep.subr.bf16.mxu0 %v358_v15  ;;  %181 = vmatprep.subr.bf16.mxu1 %v358_v15 }
  0x1f   :  { %139 = vmatpush1.bf16.msra.mxu0 %v360_v16  ;;  %182 = vmatpush1.bf16.msra.mxu1 %v360_v16 }
  0x20   :  { %212 = vmatprep.subr.bf16.mxu0 %v337_v0  ;;  %257 = vmatprep.subr.bf16.mxu1 %v337_v0 }
  0x22   :  { %157 = vmatmul.mubr.bf16.vlgmr.msra.gmra.mxu0 %v32_v17  ;;  %200 = vmatmul.mubr.bf16.vlgmr.msra.gmra.mxu1 %v331_v18 }
  0x23   :  { %213 = vmatpush1.bf16.msra.mxu0 %v339_v2  ;;  %258 = vmatpush1.bf16.msra.mxu1 %v339_v2 }
  0x24   :  { %214 = vmatprep.subr.bf16.mxu0 %v340_v3  ;;  %259 = vmatprep.subr.bf16.mxu1 %v340_v3 }
  0x25   :  { %244 = vmatprep.mubr.bf16.mxu0 %v361_v1  ;;  %289 = vmatprep.mubr.bf16.mxu1 %v361_v1 }
  0x27   :  { %215 = vmatpush1.bf16.msra.mxu0 %v342_v4  ;;  %260 = vmatpush1.bf16.msra.mxu1 %v342_v4 }
  0x28   :  { %216 = vmatprep.subr.bf16.mxu0 %v343_v5  ;;  %261 = vmatprep.subr.bf16.mxu1 %v343_v5 }
  0x2b   :  { %217 = vmatpush1.bf16.msra.mxu0 %v345_v6  ;;  %262 = vmatpush1.bf16.msra.mxu1 %v345_v6 }
  0x2c   :  { %218 = vmatprep.subr.bf16.mxu0 %v346_v7  ;;  %263 = vmatprep.subr.bf16.mxu1 %v346_v7 }
  0x2f   :  { %219 = vmatpush1.bf16.msra.mxu0 %v348_v8  ;;  %264 = vmatpush1.bf16.msra.mxu1 %v348_v8 }
  0x30   :  { %220 = vmatprep.subr.bf16.mxu0 %v349_v9  ;;  %265 = vmatprep.subr.bf16.mxu1 %v349_v9 }
  0x33   :  { %221 = vmatpush1.bf16.msra.mxu0 %v351_v10  ;;  %266 = vmatpush1.bf16.msra.mxu1 %v351_v10 }
  0x34   :  { %222 = vmatprep.subr.bf16.mxu0 %v352_v11  ;;  %267 = vmatprep.subr.bf16.mxu1 %v352_v11 }
  0x37   :  { %223 = vmatpush1.bf16.msra.mxu0 %v354_v12  ;;  %268 = vmatpush1.bf16.msra.mxu1 %v354_v12 }
  0x38   :  { %224 = vmatprep.subr.bf16.mxu0 %v355_v13  ;;  %269 = vmatprep.subr.bf16.mxu1 %v355_v13 }
  0x3b   :  { %225 = vmatpush1.bf16.msra.mxu0 %v357_v14  ;;  %270 = vmatpush1.bf16.msra.mxu1 %v357_v14 }
  0x3c   :  { %226 = vmatprep.subr.bf16.mxu0 %v358_v15  ;;  %271 = vmatprep.subr.bf16.mxu1 %v358_v15 }
  0x3f   :  { %227 = vmatpush1.bf16.msra.mxu0 %v360_v16  ;;  %272 = vmatpush1.bf16.msra.mxu1 %v360_v16 }
  0x42   :  { %245 = vmatmul.mubr.bf16.vlgmr.msra.gmra.mxu0 %v332_v19  ;;  %290 = vmatmul.mubr.bf16.vlgmr.msra.gmra.mxu1 %v333_v20 }
  0xe2   :  { %v158_v21 = vpop.f32.mrf.mxu0  ;;  %v201_v22 = vpop.f32.mrf.mxu1 }
  0xe3   :  { %v159_v36 = vadd.f32 %v158_v21, %v37_v34  ;;  %v202_v37 = vadd.f32 %v201_v22, %v37_v34 }
  0xe4   :  { %v160_v23 = vpop.f32.mrf.mxu0  ;;  %v203_v24 = vpop.f32.mrf.mxu1 }
  0xe5   :  { %v161_v38 = vadd.f32 %v160_v23, %v41_v35  ;;  %v204_v39 = vadd.f32 %v203_v24, %v41_v35  ;;  %v208_v42 = vmax.f32 %v159_v36, %v202_v37 }
  0xe6   :  { %v162_v25 = vpop.f32.mrf.mxu0  ;;  %v205_v26 = vpop.f32.mrf.mxu1 }
  0xe7   :  { %v209_v47 = vmax.f32 %v161_v38, %v204_v39 }
  0xe8   :  { %v163_v27 = vpop.f32.mrf.mxu0  ;;  %v206_v28 = vpop.f32.mrf.mxu1 }
 0x102   :  { %v246_v40 = vpop.f32.mrf.mxu0  ;;  %v291_v41 = vpop.f32.mrf.mxu1 }
 0x103   :  { %v247_v43 = vadd.f32 %v246_v40, %v37_v34  ;;  %v292_v44 = vadd.f32 %v291_v41, %v37_v34 }
 0x104   :  { %v248_v45 = vpop.f32.mrf.mxu0  ;;  %v293_v46 = vpop.f32.mrf.mxu1 }
 0x105   :  { %v253_v48 = vmax.f32 %v208_v42, %v247_v43  ;;  %v249_v49 = vadd.f32 %v248_v45, %v41_v35  ;;  %v294_v54 = vadd.f32 %v293_v46, %v41_v35 }
 0x106   :  { %v250_v50 = vpop.f32.mrf.mxu0  ;;  %v295_v51 = vpop.f32.mrf.mxu1 }
 0x107   :  { %v298_v52 = vmax.f32 %v253_v48, %v292_v44  ;;  %v254_v53 = vmax.f32 %v209_v47, %v249_v49 }
 0x108   :  { %v251_v55 = vpop.f32.mrf.mxu0  ;;  %v296_v56 = vpop.f32.mrf.mxu1 }
 0x109   :  { %v299_v57 = vmax.f32 %v254_v53, %v294_v54  ;;  %v300_v58 = vmax.f32 %v298_v52, 0.0 }
 0x10b   :  { %v301_v59 = vmax.f32 %v299_v57, 0.0 }
 0x10d   :  { %v335_v60 = vpack.c.bf16 %v301_v59, %v300_v58 }
 0x10f   :  { %310 = vst [vmem:[%s451_s3] sm:$0xff] %v335_v60 }

// kernel: mnist_model_forward.7
= control target key start
LH: loop header
LB: loop body
LE: loop exit
PB: predicated region body
PF: predicated region fallthrough
CT: control target
= control target key end

     0   :  { %v68_v8 = vlaneseq  ;;  %v589_v14 = vmov 1966171168   ;;  %s753_s0 = inlined_call_operand.vmem [shape: bf16[4,2,256], index: 0, kind: input, shape index: {}]   ;;  %s754_s1 = inlined_call_operand.vmem [shape: bf16[256,128], index: 1, kind: input, shape index: {}]   ;;  %s755_s2 = inlined_call_operand.vmem [shape: f32[1,128], index: 2, kind: input, shape index: {}]   ;;  %s756_s3 = inlined_call_operand.hbm [shape: f32[2,128], index: 3, kind: output, shape index: {}]  }
   0x1   :  { %v614_v0 = vld [vmem:[%s754_s1 + $0x78] sm:$0xff]   ;;  %v626_v2 = vld [vmem:[%s754_s1 + $0x70] sm:$0xff]   ;;  %v640_v4 = vld [vmem:[%s754_s1 + $0x68] sm:$0xff]   ;;  %v66_v15 = vunpack.c.l.s4 %v589_v14 }
   0x2   :  { %v619_v1 = vld [vmem:[%s754_s1 + $0x38] sm:$0xff]   ;;  %461 = vmatprep.subr.bf16.mxu0 %v614_v0  ;;  %483 = vmatprep.subr.bf16.mxu1 %v614_v0  ;;  %v633_v3 = vld [vmem:[%s754_s1 + $0x30] sm:$0xff]   ;;  %v647_v5 = vld [vmem:[%s754_s1 + $0x28] sm:$0xff]   ;;  %v69_v12 = vshrl.u32 %v68_v8, 7 }
   0x3   :  { %462 = vmatpush3.bf16.msra.mxu0 %v619_v1  ;;  %484 = vmatpush3.bf16.msra.mxu1 %v619_v1  ;;  %v654_v6 = vld [vmem:[%s754_s1 + $0x60] sm:$0xff]   ;;  %v668_v9 = vld [vmem:[%s754_s1 + $0x58] sm:$0xff]   ;;  %v680_v11 = vld [vmem:[%s754_s1 + $0x50] sm:$0xff]  }
   0x4   :  { %463 = vmatprep.subr.bf16.mxu0 %v626_v2  ;;  %485 = vmatprep.subr.bf16.mxu1 %v626_v2  ;;  %v661_v7 = vld [vmem:[%s754_s1 + $0x20] sm:$0xff]   ;;  %v673_v10 = vld [vmem:[%s754_s1 + $0x18] sm:$0xff]  }
   0x5   :  { %v438_v13 = vld.sshfl [vmem:[%s753_s0] sm:$0x11 pattern:$0x75316420] }
   0x6   :  { %v456_v16 = vld.sshfl [vmem:[%s753_s0 + $0x2] sm:$0x11 pattern:$0x75316420] }
   0x7   :  { %464 = vmatpush3.bf16.msra.mxu0 %v633_v3  ;;  %486 = vmatpush3.bf16.msra.mxu1 %v633_v3 }
   0x8   :  { %465 = vmatprep.subr.bf16.mxu0 %v640_v4  ;;  %487 = vmatprep.subr.bf16.mxu1 %v640_v4 }
   0xb   :  { %466 = vmatpush3.bf16.msra.mxu0 %v647_v5  ;;  %488 = vmatpush3.bf16.msra.mxu1 %v647_v5 }
   0xc   :  { %467 = vmatprep.subr.bf16.mxu0 %v654_v6  ;;  %489 = vmatprep.subr.bf16.mxu1 %v654_v6 }
   0xf   :  { %468 = vmatpush3.bf16.msra.mxu0 %v661_v7  ;;  %490 = vmatpush3.bf16.msra.mxu1 %v661_v7 }
  0x10   :  { %469 = vmatprep.subr.bf16.mxu0 %v668_v9  ;;  %491 = vmatprep.subr.bf16.mxu1 %v668_v9 }
  0x11   :  { %8 = vsyncpa [#allocation3], 0  ;;  %v562_v17 = vld [vmem:[%s754_s1 + $0x10] sm:$0xff]   ;;  %v64_v18 = vcombine.high %v438_v13, %v438_v13  ;;  %v67_v19 = vunpack.c.0.s8 %v66_v15  ;;  %v227_v20 = vcombine.high %v456_v16, %v456_v16  ;;  %v563_v21 = vld [vmem:[%s754_s1 + $0x48] sm:$0xff]   ;;  %s590_s25 = smov [#allocation2]  }
  0x12   :  { %v564_v23 = vld [vmem:[%s754_s1 + $0x8] sm:$0xff]   ;;  %v565_v26 = vld [vmem:[%s754_s1 + $0x40] sm:$0xff]   ;;  %s429_s26 = sshll.u32 %s590_s25, 4  ;;  %s430_s26 = int_to_ptr.vmem [resolvable:$true] %s429_s26 }
  0x13   :  { %470 = vmatpush3.bf16.msra.mxu0 %v673_v10  ;;  %492 = vmatpush3.bf16.msra.mxu1 %v673_v10  ;;  %v700_v22 = vsub.s32 %v67_v19, %v69_v12  ;;  %v458_v27 = vld.sshfl [vmem:[%s753_s0 + $0x4] sm:$0x11 pattern:$0x75316420]  ;;  %v437_v48 = vld [vmem:[%s755_s2] ss:$0 sm:$0xff]  ;;  %p572_p1 = scmp.lt.s32.totalorder %s430_s26, %s430_s26 }
  0x14   :  { %471 = vmatprep.subr.bf16.mxu0 %v680_v11  ;;  %493 = vmatprep.subr.bf16.mxu1 %v680_v11  ;;  %v460_v28 = vld.sshfl [vmem:[%s753_s0 + $0x6] sm:$0x11 pattern:$0x75316420]  ;;  %v295_v30 = vcombine.high %v458_v27, %v458_v27  ;;  %s567_s2 = scalar_lea.vmem %s430_s26, 32 }
  0x15   :  { %v78_v24 = vrot.slane %v64_v18, %v700_v22  ;;  %v241_v25 = vrot.slane %v227_v20, %v700_v22  ;;  %v566_v29 = vld [vmem:[%s754_s1] sm:$0xff]   ;;  %v363_v31 = vcombine.high %v460_v28, %v460_v28  ;;  %v71_v32 = vrot.slane %v438_v13, %v700_v22  ;;  %p568_p0 = scmp.ne.s32.totalorder %s430_s26, %s567_s2  ;;  %p573_p2 = scmp.lt.s32.totalorder %s567_s2, %s567_s2 }
  0x16   :  { %v234_v33 = vrot.slane %v456_v16, %v700_v22  ;;  %v309_v34 = vrot.slane %v295_v30, %v700_v22  ;;  %v302_v36 = vrot.slane %v458_v27, %v700_v22  ;;  %v370_v37 = vrot.slane %v460_v28, %v700_v22 }
  0x17   :  { %472 = vmatpush3.bf16.msra.mxu0 %v562_v17  ;;  %494 = vmatpush3.bf16.msra.mxu1 %v562_v17  ;;  %v377_v35 = vrot.slane %v363_v31, %v700_v22  ;;  %p574_p3 = por %p573_p2, %p572_p1 }
  0x18   :  { %473 = vmatprep.subr.bf16.mxu0 %v563_v21  ;;  %495 = vmatprep.subr.bf16.mxu1 %v563_v21 }
  0x19   :  { %209 = vmatprep.mubr.bf16.mxu0 %v78_v24  ;;  %276 = vmatprep.mubr.bf16.mxu1 %v241_v25  ;;  %p575_p4 = pnand %p574_p3, %p568_p0 }
  0x1b   :  { %474 = vmatpush3.bf16.msra.mxu0 %v564_v23  ;;  %496 = vmatpush3.bf16.msra.mxu1 %v564_v23 }
  0x1c   :  { %475 = vmatprep.subr.bf16.mxu0 %v565_v26  ;;  %497 = vmatprep.subr.bf16.mxu1 %v565_v26 }
  0x1f   :  { %476 = vmatpush3.bf16.msra.mxu0 %v566_v29  ;;  %498 = vmatpush3.bf16.msra.mxu1 %v566_v29 }
  0x20   :  { %505 = vmatprep.subr.bf16.mxu0 %v614_v0  ;;  %527 = vmatprep.subr.bf16.mxu1 %v614_v0 }
  0x22   :  { %210 = vmatmul.mubr.bf16.vlgmr.msra.gmra.mxu0 %v71_v32  ;;  %277 = vmatmul.mubr.bf16.vlgmr.msra.gmra.mxu1 %v234_v33 }
  0x23   :  { %506 = vmatpush3.bf16.msra.mxu0 %v619_v1  ;;  %528 = vmatpush3.bf16.msra.mxu1 %v619_v1 }
  0x24   :  { %507 = vmatprep.subr.bf16.mxu0 %v626_v2  ;;  %529 = vmatprep.subr.bf16.mxu1 %v626_v2 }
  0x25   :  { %344 = vmatprep.mubr.bf16.mxu0 %v309_v34  ;;  %412 = vmatprep.mubr.bf16.mxu1 %v377_v35 }
  0x27   :  { %508 = vmatpush3.bf16.msra.mxu0 %v633_v3  ;;  %530 = vmatpush3.bf16.msra.mxu1 %v633_v3 }
  0x28   :  { %509 = vmatprep.subr.bf16.mxu0 %v640_v4  ;;  %531 = vmatprep.subr.bf16.mxu1 %v640_v4 }
  0x2b   :  { %510 = vmatpush3.bf16.msra.mxu0 %v647_v5  ;;  %532 = vmatpush3.bf16.msra.mxu1 %v647_v5 }
  0x2c   :  { %511 = vmatprep.subr.bf16.mxu0 %v654_v6  ;;  %533 = vmatprep.subr.bf16.mxu1 %v654_v6 }
  0x2f   :  { %512 = vmatpush3.bf16.msra.mxu0 %v661_v7  ;;  %534 = vmatpush3.bf16.msra.mxu1 %v661_v7 }
  0x30   :  { %513 = vmatprep.subr.bf16.mxu0 %v668_v9  ;;  %535 = vmatprep.subr.bf16.mxu1 %v668_v9 }
  0x33   :  { %514 = vmatpush3.bf16.msra.mxu0 %v673_v10  ;;  %536 = vmatpush3.bf16.msra.mxu1 %v673_v10 }
  0x34   :  { %515 = vmatprep.subr.bf16.mxu0 %v680_v11  ;;  %537 = vmatprep.subr.bf16.mxu1 %v680_v11 }
  0x37   :  { %516 = vmatpush3.bf16.msra.mxu0 %v562_v17  ;;  %538 = vmatpush3.bf16.msra.mxu1 %v562_v17 }
  0x38   :  { %517 = vmatprep.subr.bf16.mxu0 %v563_v21  ;;  %539 = vmatprep.subr.bf16.mxu1 %v563_v21 }
  0x3b   :  { %518 = vmatpush3.bf16.msra.mxu0 %v564_v23  ;;  %540 = vmatpush3.bf16.msra.mxu1 %v564_v23 }
  0x3c   :  { %519 = vmatprep.subr.bf16.mxu0 %v565_v26  ;;  %541 = vmatprep.subr.bf16.mxu1 %v565_v26 }
  0x3f   :  { %520 = vmatpush3.bf16.msra.mxu0 %v566_v29  ;;  %542 = vmatpush3.bf16.msra.mxu1 %v566_v29 }
  0x42   :  { %345 = vmatmul.mubr.bf16.vlgmr.msra.gmra.mxu0 %v302_v36  ;;  %413 = vmatmul.mubr.bf16.vlgmr.msra.gmra.mxu1 %v370_v37 }
  0xe2   :  { %v477_v38 = vpop.f32.mrf.mxu0  ;;  %v499_v39 = vpop.f32.mrf.mxu1 }
  0xe4   :  { %v478_v40 = vpop.f32.mrf.mxu0  ;;  %v500_v41 = vpop.f32.mrf.mxu1 }
  0xe5   :  { %v479_v46 = vadd.f32 %v478_v40, %v477_v38  ;;  %v501_v47 = vadd.f32 %v500_v41, %v499_v39 }
  0xe6   :  { %v480_v42 = vpop.f32.mrf.mxu0  ;;  %v502_v43 = vpop.f32.mrf.mxu1 }
  0xe7   :  { %v212_v51 = vadd.f32 %v479_v46, %v437_v48  ;;  %v279_v52 = vadd.f32 %v501_v47, %v437_v48 }
  0xe8   :  { %v481_v44 = vpop.f32.mrf.mxu0  ;;  %v503_v45 = vpop.f32.mrf.mxu1 }
  0xe9   :  { %v284_v59 = vmax.f32 %v212_v51, %v279_v52 }
 0x102   :  { %v521_v49 = vpop.f32.mrf.mxu0  ;;  %v543_v50 = vpop.f32.mrf.mxu1 }
 0x104   :  { %v522_v53 = vpop.f32.mrf.mxu0  ;;  %v544_v54 = vpop.f32.mrf.mxu1 }
 0x105   :  { %v523_v55 = vadd.f32 %v522_v53, %v521_v49  ;;  %v545_v56 = vadd.f32 %v544_v54, %v543_v50 }
 0x106   :  { %v524_v57 = vpop.f32.mrf.mxu0  ;;  %v546_v58 = vpop.f32.mrf.mxu1 }
 0x107   :  { %v347_v60 = vadd.f32 %v523_v55, %v437_v48  ;;  %v415_v0 = vadd.f32 %v545_v56, %v437_v48 }
 0x108   :  { %v525_v61 = vpop.f32.mrf.mxu0  ;;  %v547_v62 = vpop.f32.mrf.mxu1 }
 0x109   :  { %v352_v63 = vmax.f32 %v284_v59, %v347_v60 }
 0x10b   :  { %v420_v1 = vmax.f32 %v352_v63, %v415_v0 }
 0x10d   :  { %v421_v2 = vmax.f32 %v420_v1, 0.0 }
 0x10f   :  { %422 = vst [vmem:[#allocation2] sm:$0x3] %v421_v2 }
 0x110   :  { %578 = shalt.err (!%p575_p4)
}
 0x111   :  { %432 = dma.vmem_to_hbm [thread:$0]  %s430_s26, 32, %s756_s3, [#allocation3]  }
 0x112   :  { %587 = dma.done.wait [#allocation3], 32  }
 0x113   :  { %588 = vsyncadd [#allocation3], 4294967264 }
 0x114   :  { %436 = vsyncpa [#allocation3], 1 }

// kernel: mnist_model_forward.5
= control target key start
LH: loop header
LB: loop body
LE: loop exit
PB: predicated region body
PF: predicated region fallthrough
CT: control target
= control target key end

     0   :  { %s4298_s1 = inlined_call_operand.vmem [shape: bf16[1152,128], index: 1, kind: input, shape index: {}]   ;;  %s4299_s0 = inlined_call_operand.vmem [shape: bf16[4,32,1152], index: 0, kind: input, shape index: {}]   ;;  %s4300_s2 = inlined_call_operand.vmem [shape: f32[1,128], index: 2, kind: input, shape index: {}]   ;;  %s4301_s3 = inlined_call_operand.vmem [shape: bf16[32,128], index: 3, kind: output, shape index: {}]  }
   0x1   :  { %v3122_v0 = vld [vmem:[%s4298_s1 + $0x78] sm:$0xff]   ;;  %v3145_v4 = vld [vmem:[%s4298_s1 + $0x70] sm:$0xff]   ;;  %v3169_v8 = vld [vmem:[%s4298_s1 + $0x68] sm:$0xff]  }
   0x2   :  { %v3127_v1 = vld [vmem:[%s4298_s1 + $0x38] sm:$0xff]   ;;  %2293 = vmatprep.subr.bf16.mxu0 %v3122_v0  ;;  %v3151_v5 = vld [vmem:[%s4298_s1 + $0x30] sm:$0xff]   ;;  %v3175_v9 = vld [vmem:[%s4298_s1 + $0x28] sm:$0xff]  }
   0x3   :  { %v3133_v2 = vld [vmem:[%s4298_s1 + $0xf8] sm:$0xff]   ;;  %2294 = vmatpush3.bf16.msra.mxu0 %v3127_v1  ;;  %v3157_v6 = vld [vmem:[%s4298_s1 + $0xf0] sm:$0xff]   ;;  %v3181_v10 = vld [vmem:[%s4298_s1 + $0xe8] sm:$0xff]  }
   0x4   :  { %v3139_v3 = vld [vmem:[%s4298_s1 + $0xb8] sm:$0xff]   ;;  %2321 = vmatprep.subr.bf16.mxu1 %v3133_v2  ;;  %2295 = vmatprep.subr.bf16.mxu0 %v3145_v4  ;;  %v3163_v7 = vld [vmem:[%s4298_s1 + $0xb0] sm:$0xff]   ;;  %v3187_v11 = vld [vmem:[%s4298_s1 + $0xa8] sm:$0xff]  }
   0x5   :  { %2322 = vmatpush3.bf16.msra.mxu1 %v3139_v3  ;;  %v3193_v12 = vld [vmem:[%s4298_s1 + $0x60] sm:$0xff]   ;;  %v3217_v16 = vld [vmem:[%s4298_s1 + $0x58] sm:$0xff]   ;;  %v3241_v20 = vld [vmem:[%s4298_s1 + $0x50] sm:$0xff]  }
   0x6   :  { %2323 = vmatprep.subr.bf16.mxu1 %v3157_v6  ;;  %v3199_v13 = vld [vmem:[%s4298_s1 + $0x20] sm:$0xff]   ;;  %v3223_v17 = vld [vmem:[%s4298_s1 + $0x18] sm:$0xff]   ;;  %v3247_v21 = vld [vmem:[%s4298_s1 + $0x10] sm:$0xff]  }
   0x7   :  { %2296 = vmatpush3.bf16.msra.mxu0 %v3151_v5  ;;  %v3205_v14 = vld [vmem:[%s4298_s1 + $0xe0] sm:$0xff]   ;;  %v3229_v18 = vld [vmem:[%s4298_s1 + $0xd8] sm:$0xff]   ;;  %v3253_v22 = vld [vmem:[%s4298_s1 + $0xd0] sm:$0xff]  }
   0x8   :  { %2297 = vmatprep.subr.bf16.mxu0 %v3169_v8  ;;  %v3211_v15 = vld [vmem:[%s4298_s1 + $0xa0] sm:$0xff]   ;;  %v3235_v19 = vld [vmem:[%s4298_s1 + $0x98] sm:$0xff]   ;;  %v3259_v23 = vld [vmem:[%s4298_s1 + $0x90] sm:$0xff]  }
   0x9   :  { %2324 = vmatpush3.bf16.msra.mxu1 %v3163_v7  ;;  %v3265_v24 = vld [vmem:[%s4298_s1 + $0x48] sm:$0xff]   ;;  %v3289_v28 = vld [vmem:[%s4298_s1 + $0x40] sm:$0xff]   ;;  %v3319_v34 = vld [vmem:[%s4298_s1 + $0x178] sm:$0xff]  }
   0xa   :  { %2325 = vmatprep.subr.bf16.mxu1 %v3181_v10  ;;  %4340 = vst [vmem:[#allocation2_spill] sm:$0xff] %v3265_v24  ;;  %v3271_v25 = vld [vmem:[%s4298_s1 + $0x8] sm:$0xff]   ;;  %4341 = vst [vmem:[#allocation3_spill] sm:$0xff] %v3289_v28  ;;  %v3295_v29 = vld [vmem:[%s4298_s1] sm:$0xff]  }
   0xb   :  { %2298 = vmatpush3.bf16.msra.mxu0 %v3175_v9  ;;  %v3277_v26 = vld [vmem:[%s4298_s1 + $0xc8] sm:$0xff]   ;;  %v3301_v30 = vld [vmem:[%s4298_s1 + $0xc0] sm:$0xff]   ;;  %v3332_v37 = vld [vmem:[%s4298_s1 + $0x138] sm:$0xff]  }
   0xc   :  { %2299 = vmatprep.subr.bf16.mxu0 %v3193_v12  ;;  %v3283_v27 = vld [vmem:[%s4298_s1 + $0x88] sm:$0xff]   ;;  %v2892_v31 = vld [vmem:[%s4299_s0] ss:$36 sps:$4 sm:$0xff]   ;;  %v3337_v38 = vld [vmem:[%s4298_s1 + $0x1f8] sm:$0xff]  }
   0xd   :  { %2326 = vmatpush3.bf16.msra.mxu1 %v3187_v11  ;;  %v2894_v32 = vld [vmem:[%s4299_s0 + $0x4] ss:$36 sps:$4 sm:$0xff]   ;;  %v2899_v36 = vld [vmem:[%s4299_s0 + $0xc] ss:$36 sps:$4 sm:$0xff]   ;;  %v3343_v39 = vld [vmem:[%s4298_s1 + $0x1b8] sm:$0xff]  }
   0xe   :  { %2327 = vmatprep.subr.bf16.mxu1 %v3205_v14  ;;  %v3314_v33 = vld [vmem:[%s4298_s1 + $0x80] sm:$0xff]   ;;  %742 = vmatprep.mubr.bf16.mxu0 %v2894_v32  ;;  %v2897_v35 = vld [vmem:[%s4299_s0 + $0x8] ss:$36 sps:$4 sm:$0xff]   ;;  %v3349_v40 = vld [vmem:[%s4298_s1 + $0x170] sm:$0xff]  }
   0xf   :  { %2300 = vmatpush3.bf16.msra.mxu0 %v3199_v13  ;;  %791 = vmatprep.mubr.bf16.mxu1 %v2899_v36  ;;  %v3355_v41 = vld [vmem:[%s4298_s1 + $0x130] sm:$0xff]   ;;  %v3373_v44 = vld [vmem:[%s4298_s1 + $0x168] sm:$0xff]   ;;  %v3397_v48 = vld [vmem:[%s4298_s1 + $0x160] sm:$0xff]  }
  0x10   :  { %2301 = vmatprep.subr.bf16.mxu0 %v3217_v16  ;;  %v3361_v42 = vld [vmem:[%s4298_s1 + $0x1f0] sm:$0xff]   ;;  %v3379_v45 = vld [vmem:[%s4298_s1 + $0x128] sm:$0xff]   ;;  %v3403_v49 = vld [vmem:[%s4298_s1 + $0x120] sm:$0xff]  }
  0x11   :  { %2328 = vmatpush3.bf16.msra.mxu1 %v3211_v15  ;;  %v3367_v43 = vld [vmem:[%s4298_s1 + $0x1b0] sm:$0xff]   ;;  %v3385_v46 = vld [vmem:[%s4298_s1 + $0x1e8] sm:$0xff]   ;;  %v3409_v50 = vld [vmem:[%s4298_s1 + $0x1e0] sm:$0xff]  }
  0x12   :  { %2329 = vmatprep.subr.bf16.mxu1 %v3229_v18  ;;  %v3391_v47 = vld [vmem:[%s4298_s1 + $0x1a8] sm:$0xff]   ;;  %v3415_v51 = vld [vmem:[%s4298_s1 + $0x1a0] sm:$0xff]   ;;  %v3421_v52 = vld [vmem:[%s4298_s1 + $0x158] sm:$0xff]  }
  0x13   :  { %2302 = vmatpush3.bf16.msra.mxu0 %v3223_v17  ;;  %v3427_v53 = vld [vmem:[%s4298_s1 + $0x118] sm:$0xff]   ;;  %v2917_v54 = vld [vmem:[%s4299_s0 + $0x4c] ss:$36 sps:$4 sm:$0xff]  }
  0x14   :  { %2303 = vmatprep.subr.bf16.mxu0 %v3241_v20  ;;  %v3437_v55 = vld [vmem:[%s4298_s1 + $0x1d8] sm:$0xff]   ;;  %v2920_v56 = vld [vmem:[%s4299_s0 + $0x48] ss:$36 sps:$4 sm:$0xff]   ;;  %v3455_v59 = vld [vmem:[%s4298_s1 + $0x150] sm:$0xff]  }
  0x15   :  { %2330 = vmatpush3.bf16.msra.mxu1 %v3235_v19  ;;  %v3445_v57 = vld [vmem:[%s4298_s1 + $0x198] sm:$0xff]   ;;  %v2925_v60 = vld [vmem:[%s4299_s0 + $0x50] ss:$36 sps:$4 sm:$0xff]   ;;  %v3487_v32 = vld [vmem:[%s4298_s1 + $0x108] sm:$0xff]  }
  0x16   :  { %2331 = vmatprep.subr.bf16.mxu1 %v3253_v22  ;;  %v2922_v58 = vld [vmem:[%s4299_s0 + $0x54] ss:$36 sps:$4 sm:$0xff]   ;;  %v3499_v36 = vld [vmem:[%s4298_s1 + $0x188] sm:$0xff]  }
  0x17   :  { %2304 = vmatpush3.bf16.msra.mxu0 %v3247_v21  ;;  %v3464_v61 = vld [vmem:[%s4298_s1 + $0x110] sm:$0xff]   ;;  %4345 = vst [vmem:[#allocation7_spill] sm:$0xff] %v3499_v36 }
  0x18   :  { %2305 = vmatprep.subr.bf16.mxu0 %v3265_v24  ;;  %v3469_v62 = vld [vmem:[%s4298_s1 + $0x1d0] sm:$0xff]  }
  0x19   :  { %2332 = vmatpush3.bf16.msra.mxu1 %v3259_v23  ;;  %4342 = vst [vmem:[#allocation4_spill] sm:$0xff] %v3469_v62  ;;  %v3475_v63 = vld [vmem:[%s4298_s1 + $0x190] sm:$0xff]  }
  0x1a   :  { %2333 = vmatprep.subr.bf16.mxu1 %v3277_v26  ;;  %4343 = vst [vmem:[#allocation5_spill] sm:$0xff] %v3475_v63 }
  0x1b   :  { %2306 = vmatpush3.bf16.msra.mxu0 %v3271_v25 }
  0x1c   :  { %2307 = vmatprep.subr.bf16.mxu0 %v3289_v28 }
  0x1d   :  { %2334 = vmatpush3.bf16.msra.mxu1 %v3283_v27 }
  0x1e   :  { %2335 = vmatprep.subr.bf16.mxu1 %v3301_v30 }
  0x1f   :  { %2308 = vmatpush3.bf16.msra.mxu0 %v3295_v29 }
  0x20   :  { %2349 = vmatprep.subr.bf16.mxu0 %v3319_v34 }
  0x21   :  { %2336 = vmatpush3.bf16.msra.mxu1 %v3314_v33 }
  0x22   :  { %743 = vmatmul.mubr.bf16.vlgmr.msra.gmra.mxu0 %v2892_v31  ;;  %2377 = vmatprep.subr.bf16.mxu1 %v3337_v38  ;;  %v3481_v31 = vld [vmem:[%s4298_s1 + $0x148] sm:$0xff]  }
  0x23   :  { %2350 = vmatpush3.bf16.msra.mxu0 %v3332_v37  ;;  %750 = vmatprep.mubr.bf16.mxu0 %v2917_v54  ;;  %v3505_v54 = vld [vmem:[%s4298_s1 + $0x140] sm:$0xff]  }
  0x24   :  { %792 = vmatmul.mubr.bf16.vlgmr.msra.gmra.mxu1 %v2897_v35  ;;  %2351 = vmatprep.subr.bf16.mxu0 %v3349_v40  ;;  %v3493_v35 = vld [vmem:[%s4298_s1 + $0x1c8] sm:$0xff]  }
  0x25   :  { %2378 = vmatpush3.bf16.msra.mxu1 %v3343_v39  ;;  %799 = vmatprep.mubr.bf16.mxu1 %v2922_v58  ;;  %4344 = vst [vmem:[#allocation6_spill] sm:$0xff] %v3493_v35  ;;  %v3517_v58 = vld [vmem:[%s4298_s1 + $0x1c0] sm:$0xff]  }
  0x26   :  { %2379 = vmatprep.subr.bf16.mxu1 %v3361_v42  ;;  %4346 = vst [vmem:[#allocation8_spill] sm:$0xff] %v3517_v58 }
  0x27   :  { %2352 = vmatpush3.bf16.msra.mxu0 %v3355_v41 }
  0x28   :  { %2353 = vmatprep.subr.bf16.mxu0 %v3373_v44 }
  0x29   :  { %2380 = vmatpush3.bf16.msra.mxu1 %v3367_v43 }
  0x2a   :  { %2381 = vmatprep.subr.bf16.mxu1 %v3385_v46  ;;  %751 = vmatmul.mubr.bf16.gmra.mxu0 %v2920_v56  ;;  %v3511_v56 = vld [vmem:[%s4298_s1 + $0x100] sm:$0xff]  }
  0x2b   :  { %2354 = vmatpush3.bf16.msra.mxu0 %v3379_v45 }
  0x2c   :  { %2355 = vmatprep.subr.bf16.mxu0 %v3397_v48  ;;  %800 = vmatmul.mubr.bf16.gmra.mxu1 %v2925_v60  ;;  %v2936_v60 = vld [vmem:[%s4299_s0 + $0x10] ss:$36 sps:$4 sm:$0xff]  }
  0x2d   :  { %2382 = vmatpush3.bf16.msra.mxu1 %v3391_v47 }
  0x2e   :  { %2383 = vmatprep.subr.bf16.mxu1 %v3409_v50 }
  0x2f   :  { %2356 = vmatpush3.bf16.msra.mxu0 %v3403_v49 }
  0x30   :  { %2357 = vmatprep.subr.bf16.mxu0 %v3421_v52 }
  0x31   :  { %2384 = vmatpush3.bf16.msra.mxu1 %v3415_v51 }
  0x32   :  { %2385 = vmatprep.subr.bf16.mxu1 %v3437_v55 }
  0x33   :  { %2358 = vmatpush3.bf16.msra.mxu0 %v3427_v53 }
  0x34   :  { %2359 = vmatprep.subr.bf16.mxu0 %v3455_v59 }
  0x35   :  { %2386 = vmatpush3.bf16.msra.mxu1 %v3445_v57 }
  0x36   :  { %2387 = vmatprep.subr.bf16.mxu1 %v3469_v62  ;;  %v2941_v62 = vld [vmem:[%s4299_s0 + $0x18] ss:$36 sps:$4 sm:$0xff]  }
  0x37   :  { %2360 = vmatpush3.bf16.msra.mxu0 %v3464_v61 }
  0x38   :  { %2361 = vmatprep.subr.bf16.mxu0 %v3481_v31 }
  0x39   :  { %2388 = vmatpush3.bf16.msra.mxu1 %v3475_v63  ;;  %v3535_v63 = vld [vmem:[%s4298_s1 + $0x238] sm:$0xff]  }
  0x3a   :  { %2389 = vmatprep.subr.bf16.mxu1 %v3493_v35  ;;  %v3530_v35 = vld [vmem:[%s4298_s1 + $0x180] sm:$0xff]  }
  0x3b   :  { %2362 = vmatpush3.bf16.msra.mxu0 %v3487_v32  ;;  %4347 = vst [vmem:[#allocation9_spill] sm:$0xff] %v3530_v35 }
  0x3c   :  { %2363 = vmatprep.subr.bf16.mxu0 %v3505_v54 }
  0x3d   :  { %2390 = vmatpush3.bf16.msra.mxu1 %v3499_v36  ;;  %v2938_v36 = vld [vmem:[%s4299_s0 + $0x14] ss:$36 sps:$4 sm:$0xff]  }
  0x3e   :  { %2391 = vmatprep.subr.bf16.mxu1 %v3517_v58  ;;  %840 = vmatprep.mubr.bf16.mxu0 %v2938_v36  ;;  %v2943_v58 = vld [vmem:[%s4299_s0 + $0x1c] ss:$36 sps:$4 sm:$0xff]   ;;  %v3549_v36 = vld [vmem:[%s4298_s1 + $0x230] sm:$0xff]  }
  0x3f   :  { %2364 = vmatpush3.bf16.msra.mxu0 %v3511_v56  ;;  %4348 = vst [vmem:[#allocation10_spill] sm:$0xff] %v3549_v36  ;;  %889 = vmatprep.mubr.bf16.mxu1 %v2943_v58  ;;  %v2951_v58 = vld [vmem:[%s4299_s0 + $0x60] ss:$36 sps:$4 sm:$0xff]  }
  0x40   :  { %2781 = vmatprep.subr.bf16.mxu0 %v3535_v63 }
  0x41   :  { %2392 = vmatpush3.bf16.msra.mxu1 %v3530_v35  ;;  %v2947_v35 = vld [vmem:[%s4299_s0 + $0x58] ss:$36 sps:$4 sm:$0xff]  }
  0x42   :  { %841 = vmatmul.mubr.bf16.vlgmr.msra.gmra.mxu0 %v2936_v60  ;;  %2415 = vmatprep.subr.bf16.mxu1 %v3122_v0  ;;  %v2945_v60 = vld [vmem:[%s4299_s0 + $0x5c] ss:$36 sps:$4 sm:$0xff]   ;;  %v3563_v0 = vld [vmem:[%s4298_s1 + $0x228] sm:$0xff]  }
  0x43   :  { %2782 = vmatpush3.bf16.msra.mxu0 %v3535_v63  ;;  %848 = vmatprep.mubr.bf16.mxu0 %v2945_v60  ;;  %4349 = vst [vmem:[#allocation11_spill] sm:$0xff] %v3563_v0  ;;  %v2957_v60 = vld [vmem:[%s4299_s0 + $0x20] ss:$36 sps:$4 sm:$0xff]  }
  0x44   :  { %890 = vmatmul.mubr.bf16.vlgmr.msra.gmra.mxu1 %v2941_v62  ;;  %2783 = vmatprep.subr.bf16.mxu0 %v3549_v36  ;;  %v2949_v62 = vld [vmem:[%s4299_s0 + $0x64] ss:$36 sps:$4 sm:$0xff]  }
  0x45   :  { %2416 = vmatpush3.bf16.msra.mxu1 %v3127_v1  ;;  %897 = vmatprep.mubr.bf16.mxu1 %v2949_v62  ;;  %v3577_v1 = vld [vmem:[%s4298_s1 + $0x220] sm:$0xff]   ;;  %v3610_v62 = vld [vmem:[%s4298_s1 + $0x208] sm:$0xff]  }
  0x46   :  { %2417 = vmatprep.subr.bf16.mxu1 %v3145_v4  ;;  %4350 = vst [vmem:[#allocation12_spill] sm:$0xff] %v3577_v1  ;;  %v3585_v4 = vld [vmem:[%s4298_s1 + $0x218] sm:$0xff]   ;;  %4353 = vst [vmem:[#allocation15_spill] sm:$0xff] %v3610_v62 }
  0x47   :  { %2784 = vmatpush3.bf16.msra.mxu0 %v3549_v36  ;;  %4351 = vst [vmem:[#allocation13_spill] sm:$0xff] %v3585_v4 }
  0x48   :  { %2785 = vmatprep.subr.bf16.mxu0 %v3563_v0 }
  0x49   :  { %2418 = vmatpush3.bf16.msra.mxu1 %v3151_v5  ;;  %v2961_v5 = vld [vmem:[%s4299_s0 + $0x94] ss:$36 sps:$4 sm:$0xff]  }
  0x4a   :  { %849 = vmatmul.mubr.bf16.gmra.mxu0 %v2947_v35  ;;  %2419 = vmatprep.subr.bf16.mxu1 %v3169_v8  ;;  %v3601_v35 = vld [vmem:[%s4298_s1 + $0x210] sm:$0xff]  }
  0x4b   :  { %2786 = vmatpush3.bf16.msra.mxu0 %v3563_v0  ;;  %2797 = vmatprep.mubr.bf16.mxu0 %v2957_v60  ;;  %4352 = vst [vmem:[#allocation14_spill] sm:$0xff] %v3601_v35  ;;  %v2958_v60 = vld [vmem:[%s4299_s0 + $0x68] ss:$36 sps:$4 sm:$0xff]  }
  0x4c   :  { %898 = vmatmul.mubr.bf16.gmra.mxu1 %v2951_v58  ;;  %2787 = vmatprep.subr.bf16.mxu0 %v3577_v1  ;;  %v3619_v58 = vld [vmem:[%s4298_s1 + $0x200] sm:$0xff]  }
  0x4d   :  { %2420 = vmatpush3.bf16.msra.mxu1 %v3175_v9  ;;  %1100 = vmatprep.mubr.bf16.mxu1 %v2961_v5  ;;  %4354 = vst [vmem:[#allocation16_spill] sm:$0xff] %v3619_v58  ;;  %v2967_v5 = vld [vmem:[%s4299_s0 + $0x9c] ss:$36 sps:$4 sm:$0xff]  }
  0x4e   :  { %2421 = vmatprep.subr.bf16.mxu1 %v3193_v12 }
  0x4f   :  { %2788 = vmatpush3.bf16.msra.mxu0 %v3577_v1 }
  0x50   :  { %2789 = vmatprep.subr.bf16.mxu0 %v3585_v4 }
  0x51   :  { %2422 = vmatpush3.bf16.msra.mxu1 %v3199_v13 }
  0x52   :  { %2423 = vmatprep.subr.bf16.mxu1 %v3217_v16 }
  0x53   :  { %2790 = vmatpush3.bf16.msra.mxu0 %v3585_v4 }
  0x54   :  { %2791 = vmatprep.subr.bf16.mxu0 %v3601_v35 }
  0x55   :  { %2424 = vmatpush3.bf16.msra.mxu1 %v3223_v17 }
  0x56   :  { %2425 = vmatprep.subr.bf16.mxu1 %v3241_v20 }
  0x57   :  { %2792 = vmatpush3.bf16.msra.mxu0 %v3601_v35 }
  0x58   :  { %2793 = vmatprep.subr.bf16.mxu0 %v3610_v62 }
  0x59   :  { %2426 = vmatpush3.bf16.msra.mxu1 %v3247_v21 }
  0x5a   :  { %2427 = vmatprep.subr.bf16.mxu1 %v3265_v24  ;;  %v2959_v24 = vld [vmem:[%s4299_s0 + $0x90] ss:$36 sps:$4 sm:$0xff]  }
  0x5b   :  { %2794 = vmatpush3.bf16.msra.mxu0 %v3610_v62 }
  0x5c   :  { %2795 = vmatprep.subr.bf16.mxu0 %v3619_v58 }
  0x5d   :  { %2428 = vmatpush3.bf16.msra.mxu1 %v3271_v25 }
  0x5e   :  { %2429 = vmatprep.subr.bf16.mxu1 %v3289_v28  ;;  %v2962_v28 = vld [vmem:[%s4299_s0 + $0xdc] ss:$36 sps:$4 sm:$0xff]  }
  0x5f   :  { %2796 = vmatpush3.bf16.msra.mxu0 %v3619_v58 }
  0x60   :  { %2443 = vmatprep.subr.bf16.mxu0 %v3133_v2  ;;  %v2964_v2 = vld [vmem:[%s4299_s0 + $0xd8] ss:$36 sps:$4 sm:$0xff]  }
  0x61   :  { %2430 = vmatpush3.bf16.msra.mxu1 %v3295_v29 }
  0x62   :  { %2798 = vmatmul.mubr.bf16.vlgmr.msra.gmra.mxu0 %v2958_v60  ;;  %2471 = vmatprep.subr.bf16.mxu1 %v3319_v34  ;;  %v2968_v60 = vld [vmem:[%s4299_s0 + $0xa0] ss:$36 sps:$4 sm:$0xff]  }
  0x63   :  { %2444 = vmatpush3.bf16.msra.mxu0 %v3139_v3  ;;  %1149 = vmatprep.mubr.bf16.mxu0 %v2967_v5  ;;  %v2970_v3 = vld [vmem:[%s4299_s0 + $0xa4] ss:$36 sps:$4 sm:$0xff]   ;;  %v2974_v5 = vld [vmem:[%s4299_s0 + $0xec] ss:$36 sps:$4 sm:$0xff]  }
  0x64   :  { %1101 = vmatmul.mubr.bf16.vlgmr.msra.gmra.mxu1 %v2959_v24  ;;  %2445 = vmatprep.subr.bf16.mxu0 %v3157_v6  ;;  %v2965_v24 = vld [vmem:[%s4299_s0 + $0x98] ss:$36 sps:$4 sm:$0xff]  }
  0x65   :  { %2472 = vmatpush3.bf16.msra.mxu1 %v3332_v37  ;;  %1108 = vmatprep.mubr.bf16.mxu1 %v2962_v28  ;;  %v2971_v28 = vld [vmem:[%s4299_s0 + $0xe4] ss:$36 sps:$4 sm:$0xff]  }
  0x66   :  { %2473 = vmatprep.subr.bf16.mxu1 %v3349_v40 }
  0x67   :  { %2446 = vmatpush3.bf16.msra.mxu0 %v3163_v7 }
  0x68   :  { %2447 = vmatprep.subr.bf16.mxu0 %v3181_v10 }
  0x69   :  { %2474 = vmatpush3.bf16.msra.mxu1 %v3355_v41 }
  0x6a   :  { %2475 = vmatprep.subr.bf16.mxu1 %v3373_v44 }
  0x6b   :  { %2448 = vmatpush3.bf16.msra.mxu0 %v3187_v11 }
  0x6c   :  { %2449 = vmatprep.subr.bf16.mxu0 %v3205_v14  ;;  %1109 = vmatmul.mubr.bf16.gmra.mxu1 %v2964_v2  ;;  %v2973_v2 = vld [vmem:[%s4299_s0 + $0xe0] ss:$36 sps:$4 sm:$0xff]  }
  0x6d   :  { %2476 = vmatpush3.bf16.msra.mxu1 %v3379_v45  ;;  %1198 = vmatprep.mubr.bf16.mxu1 %v2970_v3  ;;  %v2979_v3 = vld [vmem:[%s4299_s0 + $0xac] ss:$36 sps:$4 sm:$0xff]  }
  0x6e   :  { %2477 = vmatprep.subr.bf16.mxu1 %v3397_v48 }
  0x6f   :  { %2450 = vmatpush3.bf16.msra.mxu0 %v3211_v15 }
  0x70   :  { %2451 = vmatprep.subr.bf16.mxu0 %v3229_v18 }
  0x71   :  { %2478 = vmatpush3.bf16.msra.mxu1 %v3403_v49 }
  0x72   :  { %2479 = vmatprep.subr.bf16.mxu1 %v3421_v52 }
  0x73   :  { %2452 = vmatpush3.bf16.msra.mxu0 %v3235_v19 }
  0x74   :  { %2453 = vmatprep.subr.bf16.mxu0 %v3253_v22 }
  0x75   :  { %2480 = vmatpush3.bf16.msra.mxu1 %v3427_v53 }
  0x76   :  { %2481 = vmatprep.subr.bf16.mxu1 %v3455_v59 }
  0x77   :  { %2454 = vmatpush3.bf16.msra.mxu0 %v3259_v23 }
  0x78   :  { %2455 = vmatprep.subr.bf16.mxu0 %v3277_v26 }
  0x79   :  { %2482 = vmatpush3.bf16.msra.mxu1 %v3464_v61 }
  0x7a   :  { %2483 = vmatprep.subr.bf16.mxu1 %v3481_v31 }
  0x7b   :  { %2456 = vmatpush3.bf16.msra.mxu0 %v3283_v27 }
  0x7c   :  { %2457 = vmatprep.subr.bf16.mxu0 %v3301_v30 }
  0x7d   :  { %2484 = vmatpush3.bf16.msra.mxu1 %v3487_v32 }
  0x7e   :  { %2485 = vmatprep.subr.bf16.mxu1 %v3505_v54 }
  0x7f   :  { %2458 = vmatpush3.bf16.msra.mxu0 %v3314_v33 }
  0x80   :  { %2499 = vmatprep.subr.bf16.mxu0 %v3337_v38 }
  0x81   :  { %2486 = vmatpush3.bf16.msra.mxu1 %v3511_v56 }
  0x82   :  { %1150 = vmatmul.mubr.bf16.vlgmr.msra.gmra.mxu0 %v2965_v24  ;;  %2801 = vmatprep.subr.bf16.mxu1 %v3535_v63  ;;  %v2976_v24 = vld [vmem:[%s4299_s0 + $0xe8] ss:$36 sps:$4 sm:$0xff]  }
  0x83   :  { %2500 = vmatpush3.bf16.msra.mxu0 %v3343_v39  ;;  %1157 = vmatprep.mubr.bf16.mxu0 %v2971_v28  ;;  %v2980_v28 = vld [vmem:[%s4299_s0 + $0xb0] ss:$36 sps:$4 sm:$0xff]  }
  0x84   :  { %1199 = vmatmul.mubr.bf16.vlgmr.msra.gmra.mxu1 %v2968_v60  ;;  %2501 = vmatprep.subr.bf16.mxu0 %v3361_v42  ;;  %v4355_v60 = vld [vmem:[#allocation4_spill] sm:$0xff] }
  0x85   :  { %2802 = vmatpush3.bf16.msra.mxu1 %v3535_v63  ;;  %1206 = vmatprep.mubr.bf16.mxu1 %v2974_v5  ;;  %v4356_v5 = vld [vmem:[#allocation5_spill] sm:$0xff] }
  0x86   :  { %2803 = vmatprep.subr.bf16.mxu1 %v3549_v36 }
  0x87   :  { %2502 = vmatpush3.bf16.msra.mxu0 %v3367_v43 }
  0x88   :  { %2503 = vmatprep.subr.bf16.mxu0 %v3385_v46 }
  0x89   :  { %2804 = vmatpush3.bf16.msra.mxu1 %v3549_v36  ;;  %v3756_v36 = vld [vmem:[%s4298_s1 + $0xf8] sm:$0xff]  }
  0x8a   :  { %1158 = vmatmul.mubr.bf16.gmra.mxu0 %v2973_v2  ;;  %2805 = vmatprep.subr.bf16.mxu1 %v3563_v0  ;;  %v4357_v2 = vld [vmem:[#allocation6_spill] sm:$0xff]  ;;  %4362 = vst [vmem:[#allocation5_spill] sm:$0xff] %v3756_v36 }
  0x8b   :  { %2504 = vmatpush3.bf16.msra.mxu0 %v3391_v47  ;;  %1247 = vmatprep.mubr.bf16.mxu0 %v2979_v3  ;;  %v4358_v3 = vld [vmem:[#allocation7_spill] sm:$0xff] }
  0x8c   :  { %1207 = vmatmul.mubr.bf16.gmra.mxu1 %v2976_v24  ;;  %2505 = vmatprep.subr.bf16.mxu0 %v3409_v50  ;;  %v4359_v24 = vld [vmem:[#allocation8_spill] sm:$0xff] }
  0x8d   :  { %2806 = vmatpush3.bf16.msra.mxu1 %v3563_v0  ;;  %2817 = vmatprep.mubr.bf16.mxu1 %v2980_v28  ;;  %v2977_v28 = vld [vmem:[%s4299_s0 + $0xa8] ss:$36 sps:$4 sm:$0xff]  }
  0x8e   :  { %2807 = vmatprep.subr.bf16.mxu1 %v3577_v1  ;;  %v2990_v0 = vld [vmem:[%s4299_s0 + $0x12c] ss:$36 sps:$4 sm:$0xff]  }
  0x8f   :  { %2506 = vmatpush3.bf16.msra.mxu0 %v3415_v51 }
  0x90   :  { %2507 = vmatprep.subr.bf16.mxu0 %v3437_v55 }
  0x91   :  { %2808 = vmatpush3.bf16.msra.mxu1 %v3577_v1  ;;  %v3743_v1 = vld [vmem:[%s4298_s1 + $0x78] sm:$0xff]  }
  0x92   :  { %2809 = vmatprep.subr.bf16.mxu1 %v3585_v4  ;;  %4361 = vst [vmem:[#allocation4_spill] sm:$0xff] %v3743_v1 }
  0x93   :  { %2508 = vmatpush3.bf16.msra.mxu0 %v3445_v57 }
  0x94   :  { %2509 = vmatprep.subr.bf16.mxu0 %v4355_v60 }
  0x95   :  { %2810 = vmatpush3.bf16.msra.mxu1 %v3585_v4  ;;  %v4360_v4 = vld [vmem:[#allocation9_spill] sm:$0xff] }
  0x96   :  { %2811 = vmatprep.subr.bf16.mxu1 %v3601_v35 }
  0x97   :  { %2510 = vmatpush3.bf16.msra.mxu0 %v4356_v5 }
  0x98   :  { %2511 = vmatprep.subr.bf16.mxu0 %v4357_v2 }
  0x99   :  { %2812 = vmatpush3.bf16.msra.mxu1 %v3601_v35  ;;  %v2982_v35 = vld [vmem:[%s4299_s0 + $0xf4] ss:$36 sps:$4 sm:$0xff]  }
  0x9a   :  { %2813 = vmatprep.subr.bf16.mxu1 %v3610_v62 }
  0x9b   :  { %2512 = vmatpush3.bf16.msra.mxu0 %v4358_v3 }
  0x9c   :  { %2513 = vmatprep.subr.bf16.mxu0 %v4359_v24 }
  0x9d   :  { %2814 = vmatpush3.bf16.msra.mxu1 %v3610_v62  ;;  %v2981_v62 = vld [vmem:[%s4299_s0 + $0xf8] ss:$36 sps:$4 sm:$0xff]  }
  0x9e   :  { %2815 = vmatprep.subr.bf16.mxu1 %v3619_v58 }
  0x9f   :  { %2514 = vmatpush3.bf16.msra.mxu0 %v4360_v4 }
  0xa0   :  { %2537 = vmatprep.subr.bf16.mxu0 %v3743_v1  ;;  %v3762_v1 = vld [vmem:[%s4298_s1 + $0x38] sm:$0xff]  }
  0xa1   :  { %2816 = vmatpush3.bf16.msra.mxu1 %v3619_v58  ;;  %v2987_v58 = vld [vmem:[%s4299_s0 + $0x124] ss:$36 sps:$4 sm:$0xff]  }
  0xa2   :  { %1248 = vmatmul.mubr.bf16.vlgmr.msra.gmra.mxu0 %v2977_v28  ;;  %2565 = vmatprep.subr.bf16.mxu1 %v3756_v36  ;;  %v3768_v28 = vld [vmem:[%s4298_s1 + $0x70] sm:$0xff]   ;;  %v3774_v36 = vld [vmem:[%s4298_s1 + $0xb8] sm:$0xff]  }
  0xa3   :  { %2538 = vmatpush3.bf16.msra.mxu0 %v3762_v1  ;;  %1255 = vmatprep.mubr.bf16.mxu0 %v2982_v35  ;;  %v2984_v35 = vld [vmem:[%s4299_s0 + $0xf0] ss:$36 sps:$4 sm:$0xff]  }
  0xa4   :  { %2818 = vmatmul.mubr.bf16.vlgmr.msra.gmra.mxu1 %v2981_v62  ;;  %2539 = vmatprep.subr.bf16.mxu0 %v3768_v28  ;;  %v3784_v62 = vld [vmem:[%s4298_s1 + $0x30] sm:$0xff]  }
  0xa5   :  { %2566 = vmatpush3.bf16.msra.mxu1 %v3774_v36  ;;  %1511 = vmatprep.mubr.bf16.mxu1 %v2990_v0 }
  0xa6   :  { %2567 = vmatprep.subr.bf16.mxu1 %v3157_v6  ;;  %v4363_v6 = vld [vmem:[#allocation2_spill] sm:$0xff] }
  0xa7   :  { %2540 = vmatpush3.bf16.msra.mxu0 %v3784_v62 }
  0xa8   :  { %2541 = vmatprep.subr.bf16.mxu0 %v3169_v8  ;;  %v2985_v8 = vld [vmem:[%s4299_s0 + $0x120] ss:$36 sps:$4 sm:$0xff]  }
  0xa9   :  { %2568 = vmatpush3.bf16.msra.mxu1 %v3163_v7  ;;  %v4364_v7 = vld [vmem:[#allocation3_spill] sm:$0xff] }
  0xaa   :  { %1256 = vmatmul.mubr.bf16.gmra.mxu0 %v2984_v35  ;;  %2569 = vmatprep.subr.bf16.mxu1 %v3181_v10  ;;  %v2988_v10 = vld [vmem:[%s4299_s0 + $0x128] ss:$36 sps:$4 sm:$0xff]  }
  0xab   :  { %2542 = vmatpush3.bf16.msra.mxu0 %v3175_v9  ;;  %1462 = vmatprep.mubr.bf16.mxu0 %v2987_v58  ;;  %v2991_v9 = vld [vmem:[%s4299_s0 + $0x16c] ss:$36 sps:$4 sm:$0xff]  }
  0xac   :  { %2543 = vmatprep.subr.bf16.mxu0 %v3193_v12  ;;  %v2993_v12 = vld [vmem:[%s4299_s0 + $0x168] ss:$36 sps:$4 sm:$0xff]  }
  0xad   :  { %2570 = vmatpush3.bf16.msra.mxu1 %v3187_v11  ;;  %v2994_v11 = vld [vmem:[%s4299_s0 + $0x174] ss:$36 sps:$4 sm:$0xff]  }
  0xae   :  { %2571 = vmatprep.subr.bf16.mxu1 %v3205_v14  ;;  %v2996_v14 = vld [vmem:[%s4299_s0 + $0x170] ss:$36 sps:$4 sm:$0xff]  }
  0xaf   :  { %2544 = vmatpush3.bf16.msra.mxu0 %v3199_v13  ;;  %v2999_v13 = vld [vmem:[%s4299_s0 + $0x134] ss:$36 sps:$4 sm:$0xff]  }
  0xb0   :  { %2545 = vmatprep.subr.bf16.mxu0 %v3217_v16 }
  0xb1   :  { %2572 = vmatpush3.bf16.msra.mxu1 %v3211_v15  ;;  %v3002_v15 = vld [vmem:[%s4299_s0 + $0x13c] ss:$36 sps:$4 sm:$0xff]  }
  0xb2   :  { %2573 = vmatprep.subr.bf16.mxu1 %v3229_v18  ;;  %v3875_v18 = vld [vmem:[%s4300_s2] ss:$0 sm:$0xff] }
  0xb3   :  { %2546 = vmatpush3.bf16.msra.mxu0 %v3223_v17  ;;  %v2997_v17 = vld [vmem:[%s4299_s0 + $0x130] ss:$36 sps:$4 sm:$0xff]  }
  0xb4   :  { %2547 = vmatprep.subr.bf16.mxu0 %v3241_v20 }
  0xb5   :  { %2574 = vmatpush3.bf16.msra.mxu1 %v3235_v19 }
  0xb6   :  { %2575 = vmatprep.subr.bf16.mxu1 %v3253_v22  ;;  %v3003_v22 = vld [vmem:[%s4299_s0 + $0x17c] ss:$36 sps:$4 sm:$0xff]  }
  0xb7   :  { %2548 = vmatpush3.bf16.msra.mxu0 %v3247_v21 }
  0xb8   :  { %2549 = vmatprep.subr.bf16.mxu0 %v4363_v6 }
  0xb9   :  { %2576 = vmatpush3.bf16.msra.mxu1 %v3259_v23  ;;  %v3000_v23 = vld [vmem:[%s4299_s0 + $0x138] ss:$36 sps:$4 sm:$0xff]  }
  0xba   :  { %2577 = vmatprep.subr.bf16.mxu1 %v3277_v26 }
  0xbb   :  { %2550 = vmatpush3.bf16.msra.mxu0 %v3271_v25 }
  0xbc   :  { %2551 = vmatprep.subr.bf16.mxu0 %v4364_v7 }
  0xbd   :  { %2578 = vmatpush3.bf16.msra.mxu1 %v3283_v27 }
  0xbe   :  { %2579 = vmatprep.subr.bf16.mxu1 %v3301_v30  ;;  %v4365_v30 = vld [vmem:[#allocation4_spill] sm:$0xff] }
  0xbf   :  { %2552 = vmatpush3.bf16.msra.mxu0 %v3295_v29  ;;  %v3006_v29 = vld [vmem:[%s4299_s0 + $0x184] ss:$36 sps:$4 sm:$0xff]  }
  0xc0   :  { %2593 = vmatprep.subr.bf16.mxu0 %v3319_v34 }
  0xc1   :  { %2580 = vmatpush3.bf16.msra.mxu1 %v3314_v33 }
  0xc2   :  { %1463 = vmatmul.mubr.bf16.vlgmr.msra.gmra.mxu0 %v2985_v8  ;;  %2621 = vmatprep.subr.bf16.mxu1 %v3337_v38 }
  0xc3   :  { %2594 = vmatpush3.bf16.msra.mxu0 %v3332_v37  ;;  %1470 = vmatprep.mubr.bf16.mxu0 %v2991_v9  ;;  %v3051_v9 = vld [vmem:[%s4298_s1 + $0x48] sm:$0xff]  }
  0xc4   :  { %1512 = vmatmul.mubr.bf16.vlgmr.msra.gmra.mxu1 %v2988_v10  ;;  %2595 = vmatprep.subr.bf16.mxu0 %v3349_v40  ;;  %v4366_v40 = vld [vmem:[#allocation10_spill] sm:$0xff] }
  0xc5   :  { %2622 = vmatpush3.bf16.msra.mxu1 %v3343_v39  ;;  %1519 = vmatprep.mubr.bf16.mxu1 %v2994_v11 }
  0xc6   :  { %2623 = vmatprep.subr.bf16.mxu1 %v3361_v42 }
  0xc7   :  { %2596 = vmatpush3.bf16.msra.mxu0 %v3355_v41 }
  0xc8   :  { %2597 = vmatprep.subr.bf16.mxu0 %v3373_v44  ;;  %v3005_v44 = vld [vmem:[%s4299_s0 + $0x178] ss:$36 sps:$4 sm:$0xff]  }
  0xc9   :  { %2624 = vmatpush3.bf16.msra.mxu1 %v3367_v43 }
  0xca   :  { %2625 = vmatprep.subr.bf16.mxu1 %v3385_v46  ;;  %1471 = vmatmul.mubr.bf16.gmra.mxu0 %v2993_v12  ;;  %v4372_v12 = vld [vmem:[#allocation16_spill] sm:$0xff] }
  0xcb   :  { %2598 = vmatpush3.bf16.msra.mxu0 %v3379_v45  ;;  %1560 = vmatprep.mubr.bf16.mxu0 %v2999_v13  ;;  %v3009_v45 = vld [vmem:[%s4299_s0 + $0x140] ss:$36 sps:$4 sm:$0xff]   ;;  %v3052_v13 = vld [vmem:[%s4298_s1 + $0x8] sm:$0xff]  }
  0xcc   :  { %2599 = vmatprep.subr.bf16.mxu0 %v3397_v48  ;;  %1520 = vmatmul.mubr.bf16.gmra.mxu1 %v2996_v14  ;;  %v3008_v48 = vld [vmem:[%s4299_s0 + $0x180] ss:$36 sps:$4 sm:$0xff]  }
  0xcd   :  { %2626 = vmatpush3.bf16.msra.mxu1 %v3391_v47  ;;  %1609 = vmatprep.mubr.bf16.mxu1 %v3002_v15  ;;  %v4367_v47 = vld [vmem:[#allocation11_spill] sm:$0xff]  ;;  %v3053_v15 = vld [vmem:[%s4298_s1 + $0x40] sm:$0xff]  }
  0xce   :  { %2627 = vmatprep.subr.bf16.mxu1 %v3409_v50  ;;  %v3043_v50 = vld [vmem:[%s4298_s1 + $0x68] sm:$0xff]  }
  0xcf   :  { %2600 = vmatpush3.bf16.msra.mxu0 %v3403_v49  ;;  %v3013_v49 = vld [vmem:[%s4299_s0 + $0x1b4] ss:$36 sps:$4 sm:$0xff]  }
  0xd0   :  { %2601 = vmatprep.subr.bf16.mxu0 %v3421_v52  ;;  %v3044_v52 = vld [vmem:[%s4298_s1 + $0x28] sm:$0xff]  }
  0xd1   :  { %2628 = vmatpush3.bf16.msra.mxu1 %v3415_v51  ;;  %v4368_v51 = vld [vmem:[#allocation12_spill] sm:$0xff] }
  0xd2   :  { %2629 = vmatprep.subr.bf16.mxu1 %v3437_v55  ;;  %v4369_v55 = vld [vmem:[#allocation13_spill] sm:$0xff] }
  0xd3   :  { %2602 = vmatpush3.bf16.msra.mxu0 %v3427_v53  ;;  %v3045_v53 = vld [vmem:[%s4298_s1 + $0x60] sm:$0xff]  }
  0xd4   :  { %2603 = vmatprep.subr.bf16.mxu0 %v3455_v59 }
  0xd5   :  { %2630 = vmatpush3.bf16.msra.mxu1 %v3445_v57  ;;  %v3046_v57 = vld [vmem:[%s4298_s1 + $0x20] sm:$0xff]  }
  0xd6   :  { %2631 = vmatprep.subr.bf16.mxu1 %v4355_v60 }
  0xd7   :  { %2604 = vmatpush3.bf16.msra.mxu0 %v3464_v61  ;;  %v3047_v61 = vld [vmem:[%s4298_s1 + $0x58] sm:$0xff]  }
  0xd8   :  { %2605 = vmatprep.subr.bf16.mxu0 %v3481_v31 }
  0xd9   :  { %2632 = vmatpush3.bf16.msra.mxu1 %v4356_v5  ;;  %v3049_v5 = vld [vmem:[%s4298_s1 + $0x50] sm:$0xff]  }
  0xda   :  { %2633 = vmatprep.subr.bf16.mxu1 %v4357_v2 }
  0xdb   :  { %2606 = vmatpush3.bf16.msra.mxu0 %v3487_v32  ;;  %v4370_v32 = vld [vmem:[#allocation14_spill] sm:$0xff] }
  0xdc   :  { %2607 = vmatprep.subr.bf16.mxu0 %v3505_v54 }
  0xdd   :  { %2634 = vmatpush3.bf16.msra.mxu1 %v4358_v3 }
  0xde   :  { %2635 = vmatprep.subr.bf16.mxu1 %v4359_v24 }
  0xdf   :  { %2608 = vmatpush3.bf16.msra.mxu0 %v3511_v56 }
  0xe0   :  { %2821 = vmatprep.subr.bf16.mxu0 %v3535_v63 }
  0xe1   :  { %2636 = vmatpush3.bf16.msra.mxu1 %v4360_v4 }
  0xe2   :  { %v2309_v16 = vpop.f32.mrf.mxu0  ;;  %1561 = vmatmul.mubr.bf16.vlgmr.msra.gmra.mxu0 %v2997_v17  ;;  %2659 = vmatprep.subr.bf16.mxu1 %v4365_v30  ;;  %v3019_v17 = vld [vmem:[%s4299_s0 + $0x1bc] ss:$36 sps:$4 sm:$0xff]   ;;  %v3056_v30 = vld [vmem:[%s4298_s1 + $0xf0] sm:$0xff]  }
  0xe3   :  { %2822 = vmatpush3.bf16.msra.mxu0 %v3535_v63  ;;  %1568 = vmatprep.mubr.bf16.mxu0 %v3003_v22 }
  0xe4   :  { %v2310_v19 = vpop.f32.mrf.mxu0  ;;  %v2337_v21 = vpop.f32.mrf.mxu1  ;;  %1610 = vmatmul.mubr.bf16.vlgmr.msra.gmra.mxu1 %v3000_v23  ;;  %2823 = vmatprep.subr.bf16.mxu0 %v4366_v40  ;;  %v3014_v23 = vld [vmem:[%s4299_s0 + $0x1fc] ss:$36 sps:$4 sm:$0xff]  }
  0xe5   :  { %v2311_v20 = vadd.f32 %v2310_v19, %v2309_v16  ;;  %2660 = vmatpush3.bf16.msra.mxu1 %v3762_v1  ;;  %1617 = vmatprep.mubr.bf16.mxu1 %v3006_v29  ;;  %v3048_v1 = vld [vmem:[%s4298_s1 + $0x18] sm:$0xff]   ;;  %v3010_v16 = vld [vmem:[%s4299_s0 + $0x188] ss:$36 sps:$4 sm:$0xff]  }
  0xe6   :  { %v2312_v25 = vpop.f32.mrf.mxu0  ;;  %v2338_v27 = vpop.f32.mrf.mxu1  ;;  %2661 = vmatprep.subr.bf16.mxu1 %v3768_v28  ;;  %v4371_v28 = vld [vmem:[#allocation15_spill] sm:$0xff]  ;;  %v4373_v19 = vld [vmem:[#allocation5_spill] sm:$0xff] }
  0xe7   :  { %v745_v26 = vadd.f32 %v2311_v20, %v3875_v18  ;;  %v2339_v33 = vadd.f32 %v2338_v27, %v2337_v21  ;;  %2824 = vmatpush3.bf16.msra.mxu0 %v4366_v40  ;;  %v3011_v20 = vld [vmem:[%s4299_s0 + $0x1b0] ss:$36 sps:$4 sm:$0xff]   ;;  %v3054_v21 = vld [vmem:[%s4298_s1] sm:$0xff]  }
  0xe8   :  { %v2313_v34 = vpop.f32.mrf.mxu0  ;;  %v2340_v38 = vpop.f32.mrf.mxu1  ;;  %2825 = vmatprep.subr.bf16.mxu0 %v4367_v47 }
  0xe9   :  { %v2314_v37 = vadd.f32 %v2313_v34, %v2312_v25  ;;  %v3892_v39 = vadd.f32 %v2339_v33, %v745_v26  ;;  %2662 = vmatpush3.bf16.msra.mxu1 %v3784_v62  ;;  %v3050_v62 = vld [vmem:[%s4298_s1 + $0x10] sm:$0xff]   ;;  %v3055_v25 = vld [vmem:[%s4298_s1 + $0x178] sm:$0xff]  }
  0xea   :  { %v2341_v42 = vpop.f32.mrf.mxu1  ;;  %1569 = vmatmul.mubr.bf16.gmra.mxu0 %v3005_v44  ;;  %2663 = vmatprep.subr.bf16.mxu1 %v3043_v50  ;;  %v2315_v59 = vpop.f32.mrf.mxu0  ;;  %v3057_v33 = vld [vmem:[%s4298_s1 + $0x138] sm:$0xff]  }
  0xeb   :  { %v748_v41 = vadd.f32 %v2314_v37, %v3875_v18  ;;  %v2342_v43 = vadd.f32 %v2341_v42, %v2340_v38  ;;  %2826 = vmatpush3.bf16.msra.mxu0 %v4367_v47  ;;  %2837 = vmatprep.mubr.bf16.mxu0 %v3009_v45  ;;  %v3058_v38 = vld [vmem:[%s4298_s1 + $0x170] sm:$0xff]  }
  0xec   :  { %1618 = vmatmul.mubr.bf16.gmra.mxu1 %v3008_v48  ;;  %2827 = vmatprep.subr.bf16.mxu0 %v4368_v51  ;;  %v2316_v31 = vpop.f32.mrf.mxu0  ;;  %v2343_v4 = vpop.f32.mrf.mxu1  ;;  %v3059_v42 = vld [vmem:[%s4298_s1 + $0xb0] sm:$0xff]   ;;  %v3060_v48 = vld [vmem:[%s4298_s1 + $0xe8] sm:$0xff]  }
  0xed   :  { %v3905_v46 = vadd.f32 %v2342_v43, %v748_v41  ;;  %2664 = vmatpush3.bf16.msra.mxu1 %v3044_v52  ;;  %1824 = vmatprep.mubr.bf16.mxu1 %v3013_v49  ;;  %v2317_v0 = vadd.f32 %v2316_v31, %v2315_v59  ;;  %v3061_v49 = vld [vmem:[%s4298_s1 + $0x130] sm:$0xff]   ;;  %v3022_v52 = vld [vmem:[%s4299_s0 + $0x1c4] ss:$36 sps:$4 sm:$0xff]  }
  0xee   :  { %2665 = vmatprep.subr.bf16.mxu1 %v3045_v53  ;;  %v2318_v58 = vpop.f32.mrf.mxu0  ;;  %v2344_v2 = vpop.f32.mrf.mxu1 }
  0xef   :  { %2828 = vmatpush3.bf16.msra.mxu0 %v4368_v51  ;;  %v753_v60 = vadd.f32 %v2317_v0, %v3875_v18  ;;  %v2345_v24 = vadd.f32 %v2344_v2, %v2343_v4  ;;  %v3063_v0 = vld [vmem:[%s4298_s1 + $0xa8] sm:$0xff]  }
  0xf0   :  { %2829 = vmatprep.subr.bf16.mxu0 %v4369_v55  ;;  %v2319_v3 = vpop.f32.mrf.mxu0  ;;  %v2346_v6 = vpop.f32.mrf.mxu1 }
  0xf1   :  { %2666 = vmatpush3.bf16.msra.mxu1 %v3046_v57  ;;  %v2320_v35 = vadd.f32 %v2319_v3, %v2318_v58  ;;  %v3948_v7 = vadd.f32 %v2345_v24, %v753_v60  ;;  %v3064_v60 = vld [vmem:[%s4298_s1 + $0xe0] sm:$0xff]  }
  0xf2   :  { %2667 = vmatprep.subr.bf16.mxu1 %v3047_v61  ;;  %v2347_v10 = vpop.f32.mrf.mxu1  ;;  %v3062_v61 = vld [vmem:[%s4298_s1 + $0x168] sm:$0xff]  }
  0xf3   :  { %2830 = vmatpush3.bf16.msra.mxu0 %v4369_v55  ;;  %v756_v8 = vadd.f32 %v2320_v35, %v3875_v18  ;;  %v2348_v11 = vadd.f32 %v2347_v10, %v2346_v6  ;;  %v3066_v35 = vld [vmem:[%s4298_s1 + $0x160] sm:$0xff]  }
  0xf4   :  { %2831 = vmatprep.subr.bf16.mxu0 %v4370_v32  ;;  %v3067_v6 = vld [vmem:[%s4298_s1 + $0xa0] sm:$0xff]  }
  0xf5   :  { %2668 = vmatpush3.bf16.msra.mxu1 %v3048_v1  ;;  %v3959_v14 = vadd.f32 %v2348_v11, %v756_v8  ;;  %v3068_v11 = vld [vmem:[%s4298_s1 + $0xd8] sm:$0xff]  }
  0xf6   :  { %2669 = vmatprep.subr.bf16.mxu1 %v3049_v5 }
  0xf7   :  { %2832 = vmatpush3.bf16.msra.mxu0 %v4370_v32 }
  0xf8   :  { %2833 = vmatprep.subr.bf16.mxu0 %v4371_v28 }
  0xf9   :  { %2670 = vmatpush3.bf16.msra.mxu1 %v3050_v62 }
  0xfa   :  { %2671 = vmatprep.subr.bf16.mxu1 %v3051_v9 }
  0xfb   :  { %2834 = vmatpush3.bf16.msra.mxu0 %v4371_v28 }
  0xfc   :  { %2835 = vmatprep.subr.bf16.mxu0 %v4372_v12 }
  0xfd   :  { %2672 = vmatpush3.bf16.msra.mxu1 %v3052_v13 }
  0xfe   :  { %2673 = vmatprep.subr.bf16.mxu1 %v3053_v15 }
  0xff   :  { %2836 = vmatpush3.bf16.msra.mxu0 %v4372_v12 }
 0x100   :  { %2687 = vmatprep.subr.bf16.mxu0 %v4373_v19 }
 0x101   :  { %2674 = vmatpush3.bf16.msra.mxu1 %v3054_v21  ;;  %v3072_v21 = vld [vmem:[%s4298_s1 + $0xd0] sm:$0xff]  }
 0x102   :  { %v2365_v22 = vpop.f32.mrf.mxu0  ;;  %2838 = vmatmul.mubr.bf16.vlgmr.msra.gmra.mxu0 %v3010_v16  ;;  %2715 = vmatprep.subr.bf16.mxu1 %v3055_v25  ;;  %v3075_v25 = vld [vmem:[%s4298_s1 + $0x90] sm:$0xff]  }
 0x103   :  { %2688 = vmatpush3.bf16.msra.mxu0 %v3774_v36  ;;  %1873 = vmatprep.mubr.bf16.mxu0 %v3019_v17  ;;  %v3070_v17 = vld [vmem:[%s4298_s1 + $0x158] sm:$0xff]  }
 0x104   :  { %v2366_v26 = vpop.f32.mrf.mxu0  ;;  %v2393_v29 = vpop.f32.mrf.mxu1  ;;  %1825 = vmatmul.mubr.bf16.vlgmr.msra.gmra.mxu1 %v3011_v20  ;;  %2689 = vmatprep.subr.bf16.mxu0 %v3056_v30  ;;  %v3071_v20 = vld [vmem:[%s4298_s1 + $0x98] sm:$0xff]   ;;  %v3079_v30 = vld [vmem:[%s4298_s1 + $0x88] sm:$0xff]  }
 0x105   :  { %v2367_v27 = vadd.f32 %v2366_v26, %v2365_v22  ;;  %2716 = vmatpush3.bf16.msra.mxu1 %v3057_v33  ;;  %1832 = vmatprep.mubr.bf16.mxu1 %v3014_v23  ;;  %v3074_v23 = vld [vmem:[%s4298_s1 + $0x150] sm:$0xff]   ;;  %v3076_v26 = vld [vmem:[%s4298_s1 + $0xc8] sm:$0xff]   ;;  %v3080_v33 = vld [vmem:[%s4298_s1 + $0xc0] sm:$0xff]  }
 0x106   :  { %v2368_v34 = vpop.f32.mrf.mxu0  ;;  %v2394_v36 = vpop.f32.mrf.mxu1  ;;  %2717 = vmatprep.subr.bf16.mxu1 %v3058_v38  ;;  %v3023_v38 = vld [vmem:[%s4299_s0 + $0x204] ss:$36 sps:$4 sm:$0xff]  }
 0x107   :  { %v843_v37 = vadd.f32 %v2367_v27, %v3892_v39  ;;  %v2395_v41 = vadd.f32 %v2394_v36, %v2393_v29  ;;  %2690 = vmatpush3.bf16.msra.mxu0 %v3059_v42  ;;  %v3016_v39 = vld [vmem:[%s4299_s0 + $0x1f8] ss:$36 sps:$4 sm:$0xff]   ;;  %v3077_v27 = vld [vmem:[%s4298_s1 + $0x110] sm:$0xff]   ;;  %v3078_v29 = vld [vmem:[%s4298_s1 + $0x148] sm:$0xff]  }
 0x108   :  { %v2369_v43 = vpop.f32.mrf.mxu0  ;;  %v2396_v45 = vpop.f32.mrf.mxu1  ;;  %2691 = vmatprep.subr.bf16.mxu0 %v3060_v48  ;;  %v3082_v36 = vld [vmem:[%s4298_s1 + $0x80] sm:$0xff]   ;;  %v3026_v42 = vld [vmem:[%s4299_s0 + $0x20c] ss:$36 sps:$4 sm:$0xff]  }
 0x109   :  { %v2370_v44 = vadd.f32 %v2369_v43, %v2368_v34  ;;  %2718 = vmatpush3.bf16.msra.mxu1 %v3061_v49  ;;  %v4010_v53 = vadd.f32 %v2395_v41, %v843_v37  ;;  %v3081_v34 = vld [vmem:[%s4298_s1 + $0x108] sm:$0xff]   ;;  %v3017_v37 = vld [vmem:[%s4299_s0 + $0x1b8] ss:$36 sps:$4 sm:$0xff]  }
 0x10a   :  { %v2371_v50 = vpop.f32.mrf.mxu0  ;;  %v2397_v59 = vpop.f32.mrf.mxu1  ;;  %2719 = vmatprep.subr.bf16.mxu1 %v3062_v61  ;;  %v3083_v41 = vld [vmem:[%s4298_s1 + $0x1f8] sm:$0xff]   ;;  %v3086_v61 = vld [vmem:[%s4298_s1 + $0x1b0] sm:$0xff]  }
 0x10b   :  { %v846_v57 = vadd.f32 %v2370_v44, %v3905_v46  ;;  %v2398_v31 = vadd.f32 %v2397_v59, %v2396_v45  ;;  %2692 = vmatpush3.bf16.msra.mxu0 %v3063_v0  ;;  %v3065_v46 = vld [vmem:[%s4298_s1 + $0x128] sm:$0xff]   ;;  %v3084_v45 = vld [vmem:[%s4298_s1 + $0x1b8] sm:$0xff]  }
 0x10c   :  { %v2372_v1 = vpop.f32.mrf.mxu0  ;;  %v2399_v58 = vpop.f32.mrf.mxu1  ;;  %2693 = vmatprep.subr.bf16.mxu0 %v3064_v60  ;;  %1833 = vmatmul.mubr.bf16.gmra.mxu1 %v3016_v39  ;;  %v3087_v0 = vld [vmem:[%s4298_s1 + $0x1e8] sm:$0xff]   ;;  %v3032_v60 = vld [vmem:[%s4299_s0 + $0x1d0] ss:$36 sps:$4 sm:$0xff]  }
 0x10d   :  { %v2373_v4 = vadd.f32 %v2372_v1, %v2371_v50  ;;  %2720 = vmatpush3.bf16.msra.mxu1 %v3065_v46  ;;  %1922 = vmatprep.mubr.bf16.mxu1 %v3022_v52  ;;  %v4025_v2 = vadd.f32 %v2398_v31, %v846_v57  ;;  %v3025_v52 = vld [vmem:[%s4299_s0 + $0x200] ss:$36 sps:$4 sm:$0xff]   ;;  %v3028_v1 = vld [vmem:[%s4299_s0 + $0x208] ss:$36 sps:$4 sm:$0xff]  }
 0x10e   :  { %v2374_v5 = vpop.f32.mrf.mxu0  ;;  %v2400_v24 = vpop.f32.mrf.mxu1  ;;  %2721 = vmatprep.subr.bf16.mxu1 %v3066_v35  ;;  %v3090_v35 = vld [vmem:[%s4298_s1 + $0x1a0] sm:$0xff]  }
 0x10f   :  { %v851_v3 = vadd.f32 %v2373_v4, %v3948_v7  ;;  %v2401_v62 = vadd.f32 %v2400_v24, %v2399_v58  ;;  %2694 = vmatpush3.bf16.msra.mxu0 %v3067_v6  ;;  %v3069_v7 = vld [vmem:[%s4298_s1 + $0x120] sm:$0xff]   ;;  %v3091_v6 = vld [vmem:[%s4298_s1 + $0x1d8] sm:$0xff]  }
 0x110   :  { %v2375_v8 = vpop.f32.mrf.mxu0  ;;  %v2402_v10 = vpop.f32.mrf.mxu1  ;;  %2695 = vmatprep.subr.bf16.mxu0 %v3068_v11  ;;  %v3093_v11 = vld [vmem:[%s4298_s1 + $0x1d0] sm:$0xff]  }
 0x111   :  { %v2376_v9 = vadd.f32 %v2375_v8, %v2374_v5  ;;  %2722 = vmatpush3.bf16.msra.mxu1 %v3069_v7  ;;  %v900_v13 = vadd.f32 %v2401_v62, %v851_v3  ;;  %v3088_v5 = vld [vmem:[%s4298_s1 + $0x1a8] sm:$0xff]  }
 0x112   :  { %v2403_v16 = vpop.f32.mrf.mxu1  ;;  %2723 = vmatprep.subr.bf16.mxu1 %v3070_v17  ;;  %v3095_v7 = vld [vmem:[%s4298_s1 + $0x1c8] sm:$0xff]   ;;  %v3033_v17 = vld [vmem:[%s4299_s0 + $0x218] ss:$36 sps:$4 sm:$0xff]  }
 0x113   :  { %v854_v15 = vadd.f32 %v2376_v9, %v3959_v14  ;;  %v2404_v19 = vadd.f32 %v2403_v16, %v2402_v10  ;;  %2696 = vmatpush3.bf16.msra.mxu0 %v3071_v20  ;;  %v3073_v14 = vld [vmem:[%s4298_s1 + $0x118] sm:$0xff]  }
 0x114   :  { %2697 = vmatprep.subr.bf16.mxu0 %v3072_v21  ;;  %v3092_v9 = vld [vmem:[%s4298_s1 + $0x198] sm:$0xff]  }
 0x115   :  { %2724 = vmatpush3.bf16.msra.mxu1 %v3073_v14  ;;  %v903_v22 = vadd.f32 %v2404_v19, %v854_v15  ;;  %v3029_v15 = vld [vmem:[%s4299_s0 + $0x1c8] ss:$36 sps:$4 sm:$0xff]   ;;  %v3034_v16 = vld [vmem:[%s4299_s0 + $0x214] ss:$36 sps:$4 sm:$0xff]  }
 0x116   :  { %2725 = vmatprep.subr.bf16.mxu1 %v3074_v23 }
 0x117   :  { %2698 = vmatpush3.bf16.msra.mxu0 %v3075_v25  ;;  %v3036_v25 = vld [vmem:[%s4299_s0 + $0x210] ss:$36 sps:$4 sm:$0xff]  }
 0x118   :  { %2699 = vmatprep.subr.bf16.mxu0 %v3076_v26 }
 0x119   :  { %2726 = vmatpush3.bf16.msra.mxu1 %v3077_v27 }
 0x11a   :  { %2727 = vmatprep.subr.bf16.mxu1 %v3078_v29 }
 0x11b   :  { %2700 = vmatpush3.bf16.msra.mxu0 %v3079_v30 }
 0x11c   :  { %2701 = vmatprep.subr.bf16.mxu0 %v3080_v33 }
 0x11d   :  { %2728 = vmatpush3.bf16.msra.mxu1 %v3081_v34 }
 0x11e   :  { %2729 = vmatprep.subr.bf16.mxu1 %v3505_v54  ;;  %v3020_v54 = vld [vmem:[%s4299_s0 + $0x1c0] ss:$36 sps:$4 sm:$0xff]  }
 0x11f   :  { %2702 = vmatpush3.bf16.msra.mxu0 %v3082_v36 }
 0x120   :  { %2743 = vmatprep.subr.bf16.mxu0 %v3083_v41 }
 0x121   :  { %2730 = vmatpush3.bf16.msra.mxu1 %v3511_v56  ;;  %v3085_v56 = vld [vmem:[%s4298_s1 + $0x1f0] sm:$0xff]  }
 0x122   :  { %v2799_v43 = vpop.f32.mrf.mxu0  ;;  %1874 = vmatmul.mubr.bf16.vlgmr.msra.gmra.mxu0 %v3017_v37  ;;  %2841 = vmatprep.subr.bf16.mxu1 %v3535_v63 }
 0x123   :  { %v4098_v44 = vadd.f32 %v2799_v43, %v900_v13  ;;  %2744 = vmatpush3.bf16.msra.mxu0 %v3084_v45  ;;  %1881 = vmatprep.mubr.bf16.mxu0 %v3023_v38  ;;  %v3097_v13 = vld [vmem:[%s4298_s1 + $0x1c0] sm:$0xff]  }
 0x124   :  { %v940_v48 = vpop.f32.mrf.mxu0  ;;  %1923 = vmatmul.mubr.bf16.vlgmr.msra.gmra.mxu1 %v3020_v54  ;;  %2745 = vmatprep.subr.bf16.mxu0 %v3085_v56  ;;  %v2431_v39 = vpop.f32.mrf.mxu1 }
 0x125   :  { %4374 = vst [vmem:[#allocation6_spill] sm:$0xff] %v4098_v44  ;;  %v4107_v49 = vadd.f32 %v940_v48, %v4010_v53  ;;  %2842 = vmatpush3.bf16.msra.mxu1 %v3535_v63  ;;  %1930 = vmatprep.mubr.bf16.mxu1 %v3026_v42  ;;  %v3031_v63 = vld [vmem:[%s4299_s0 + $0x1cc] ss:$36 sps:$4 sm:$0xff]  }
 0x126   :  { %v2800_v50 = vpop.f32.mrf.mxu0  ;;  %2843 = vmatprep.subr.bf16.mxu1 %v4366_v40  ;;  %v2432_v57 = vpop.f32.mrf.mxu1 }
 0x127   :  { %4375 = vst [vmem:[#allocation7_spill] sm:$0xff] %v4107_v49  ;;  %v4114_v59 = vadd.f32 %v2800_v50, %v903_v22  ;;  %2746 = vmatpush3.bf16.msra.mxu0 %v3086_v61  ;;  %v4119_v53 = vadd.f32 %v2432_v57, %v2431_v39 }
 0x128   :  { %v943_v31 = vpop.f32.mrf.mxu0  ;;  %2747 = vmatprep.subr.bf16.mxu0 %v3087_v0  ;;  %v2434_v4 = vpop.f32.mrf.mxu1 }
 0x129   :  { %4376 = vst [vmem:[#allocation8_spill] sm:$0xff] %v4114_v59  ;;  %v4131_v58 = vadd.f32 %v943_v31, %v4025_v2  ;;  %2844 = vmatpush3.bf16.msra.mxu1 %v4366_v40  ;;  %v3089_v40 = vld [vmem:[%s4298_s1 + $0x1e0] sm:$0xff]   ;;  %v1103_v21 = vadd.f32 %v4119_v53, %v3875_v18 }
 0x12a   :  { %1882 = vmatmul.mubr.bf16.gmra.mxu0 %v3025_v52  ;;  %2845 = vmatprep.subr.bf16.mxu1 %v4367_v47  ;;  %v2435_v46 = vpop.f32.mrf.mxu1 }
 0x12b   :  { %4377 = vst [vmem:[#allocation9_spill] sm:$0xff] %v4131_v58  ;;  %2748 = vmatpush3.bf16.msra.mxu0 %v3088_v5  ;;  %v2436_v3 = vadd.f32 %v2435_v46, %v2434_v4  ;;  %1971 = vmatprep.mubr.bf16.mxu0 %v3031_v63 }
 0x12c   :  { %1931 = vmatmul.mubr.bf16.gmra.mxu1 %v3028_v1  ;;  %2749 = vmatprep.subr.bf16.mxu0 %v3089_v40  ;;  %v2437_v2 = vpop.f32.mrf.mxu1 }
 0x12d   :  { %2846 = vmatpush3.bf16.msra.mxu1 %v4367_v47  ;;  %2857 = vmatprep.mubr.bf16.mxu1 %v3032_v60  ;;  %v1106_v30 = vadd.f32 %v2436_v3, %v3875_v18 }
 0x12e   :  { %2847 = vmatprep.subr.bf16.mxu1 %v4368_v51  ;;  %v2438_v24 = vpop.f32.mrf.mxu1 }
 0x12f   :  { %2750 = vmatpush3.bf16.msra.mxu0 %v3090_v35  ;;  %v2439_v62 = vadd.f32 %v2438_v24, %v2437_v2 }
 0x130   :  { %2751 = vmatprep.subr.bf16.mxu0 %v3091_v6  ;;  %v2440_v8 = vpop.f32.mrf.mxu1 }
 0x131   :  { %2848 = vmatpush3.bf16.msra.mxu1 %v4368_v51  ;;  %v3094_v51 = vld [vmem:[%s4298_s1 + $0x190] sm:$0xff]   ;;  %v1111_v43 = vadd.f32 %v2439_v62, %v3875_v18 }
 0x132   :  { %2849 = vmatprep.subr.bf16.mxu1 %v4369_v55  ;;  %v2441_v47 = vpop.f32.mrf.mxu1 }
 0x133   :  { %2752 = vmatpush3.bf16.msra.mxu0 %v3092_v9  ;;  %v2442_v10 = vadd.f32 %v2441_v47, %v2440_v8 }
 0x134   :  { %2753 = vmatprep.subr.bf16.mxu0 %v3093_v11 }
 0x135   :  { %2850 = vmatpush3.bf16.msra.mxu1 %v4369_v55  ;;  %v3096_v55 = vld [vmem:[%s4298_s1 + $0x188] sm:$0xff]   ;;  %v1114_v53 = vadd.f32 %v2442_v10, %v3875_v18 }
 0x136   :  { %2851 = vmatprep.subr.bf16.mxu1 %v4370_v32 }
 0x137   :  { %2754 = vmatpush3.bf16.msra.mxu0 %v3094_v51 }
 0x138   :  { %2755 = vmatprep.subr.bf16.mxu0 %v3095_v7 }
 0x139   :  { %2852 = vmatpush3.bf16.msra.mxu1 %v4370_v32  ;;  %v3098_v32 = vld [vmem:[%s4298_s1 + $0x180] sm:$0xff]  }
 0x13a   :  { %2853 = vmatprep.subr.bf16.mxu1 %v4371_v28 }
 0x13b   :  { %2756 = vmatpush3.bf16.msra.mxu0 %v3096_v55 }
 0x13c   :  { %2757 = vmatprep.subr.bf16.mxu0 %v3097_v13 }
 0x13d   :  { %2854 = vmatpush3.bf16.msra.mxu1 %v4371_v28 }
 0x13e   :  { %2855 = vmatprep.subr.bf16.mxu1 %v4372_v12 }
 0x13f   :  { %2758 = vmatpush3.bf16.msra.mxu0 %v3098_v32 }
 0x141   :  { %2856 = vmatpush3.bf16.msra.mxu1 %v4372_v12 }
 0x142   :  { %v2459_v28 = vpop.f32.mrf.mxu0  ;;  %1972 = vmatmul.mubr.bf16.vlgmr.msra.gmra.mxu0 %v3029_v15 }
 0x143   :  { %1979 = vmatprep.mubr.bf16.mxu0 %v3034_v16 }
 0x144   :  { %v2460_v19 = vpop.f32.mrf.mxu0  ;;  %v2487_v20 = vpop.f32.mrf.mxu1  ;;  %2858 = vmatmul.mubr.bf16.vlgmr.msra.gmra.mxu1 %v3033_v17 }
 0x145   :  { %v2461_v14 = vadd.f32 %v2460_v19, %v2459_v28 }
 0x146   :  { %v2462_v22 = vpop.f32.mrf.mxu0  ;;  %v2488_v23 = vpop.f32.mrf.mxu1 }
 0x147   :  { %v1152_v26 = vadd.f32 %v2461_v14, %v1103_v21  ;;  %v2489_v27 = vadd.f32 %v2488_v23, %v2487_v20 }
 0x148   :  { %v2463_v29 = vpop.f32.mrf.mxu0  ;;  %v2490_v12 = vpop.f32.mrf.mxu1 }
 0x149   :  { %v1201_v33 = vadd.f32 %v2489_v27, %v1152_v26  ;;  %v2464_v34 = vadd.f32 %v2463_v29, %v2462_v22 }
 0x14a   :  { %v2465_v37 = vpop.f32.mrf.mxu0  ;;  %v2491_v36 = vpop.f32.mrf.mxu1  ;;  %1980 = vmatmul.mubr.bf16.gmra.mxu0 %v3036_v25 }
 0x14b   :  { %v1155_v38 = vadd.f32 %v2464_v34, %v1106_v30  ;;  %v2492_v41 = vadd.f32 %v2491_v36, %v2490_v12 }
 0x14c   :  { %v2466_v54 = vpop.f32.mrf.mxu0  ;;  %v2493_v42 = vpop.f32.mrf.mxu1 }
 0x14d   :  { %v1204_v45 = vadd.f32 %v2492_v41, %v1155_v38  ;;  %v2467_v48 = vadd.f32 %v2466_v54, %v2465_v37 }
 0x14e   :  { %v2468_v56 = vpop.f32.mrf.mxu0  ;;  %v2494_v39 = vpop.f32.mrf.mxu1 }
 0x14f   :  { %v1160_v50 = vadd.f32 %v2467_v48, %v1111_v43  ;;  %v2495_v52 = vadd.f32 %v2494_v39, %v2493_v42 }
 0x150   :  { %v2469_v57 = vpop.f32.mrf.mxu0  ;;  %v2496_v61 = vpop.f32.mrf.mxu1 }
 0x151   :  { %v1209_v63 = vadd.f32 %v2495_v52, %v1160_v50  ;;  %v2470_v31 = vadd.f32 %v2469_v57, %v2468_v56 }
 0x152   :  { %v2497_v0 = vpop.f32.mrf.mxu1 }
 0x153   :  { %v1163_v1 = vadd.f32 %v2470_v31, %v1114_v53  ;;  %v2498_v4 = vadd.f32 %v2497_v0, %v2496_v61 }
 0x155   :  { %v1212_v60 = vadd.f32 %v2498_v4, %v1163_v1 }
 0x162   :  { %v2515_v46 = vpop.f32.mrf.mxu0 }
 0x164   :  { %v2516_v5 = vpop.f32.mrf.mxu0  ;;  %v2819_v3 = vpop.f32.mrf.mxu1 }
 0x165   :  { %v2517_v40 = vadd.f32 %v2516_v5, %v2515_v46 }
 0x166   :  { %v2518_v2 = vpop.f32.mrf.mxu0  ;;  %v1298_v24 = vpop.f32.mrf.mxu1 }
 0x167   :  { %v1250_v35 = vadd.f32 %v2517_v40, %v1201_v33 }
 0x168   :  { %v2519_v62 = vpop.f32.mrf.mxu0  ;;  %v2820_v6 = vpop.f32.mrf.mxu1 }
 0x169   :  { %v2520_v8 = vadd.f32 %v2519_v62, %v2518_v2  ;;  %v4199_v47 = vadd.f32 %v1298_v24, %v1250_v35 }
 0x16a   :  { %v2521_v9 = vpop.f32.mrf.mxu0  ;;  %v1301_v10 = vpop.f32.mrf.mxu1 }
 0x16b   :  { %4378 = vst [vmem:[#allocation2_spill] sm:$0xff] %v4199_v47  ;;  %v1253_v51 = vadd.f32 %v2520_v8, %v1204_v45 }
 0x16c   :  { %v2522_v7 = vpop.f32.mrf.mxu0 }
 0x16d   :  { %v2523_v55 = vadd.f32 %v2522_v7, %v2521_v9  ;;  %v4203_v13 = vadd.f32 %v1301_v10, %v1253_v51 }
 0x16e   :  { %v2524_v15 = vpop.f32.mrf.mxu0 }
 0x16f   :  { %4379 = vst [vmem:[#allocation3_spill] sm:$0xff] %v4203_v13  ;;  %v1258_v32 = vadd.f32 %v2523_v55, %v1209_v63 }
 0x170   :  { %v2525_v17 = vpop.f32.mrf.mxu0 }
 0x171   :  { %v4207_v28 = vadd.f32 %v2819_v3, %v1258_v32  ;;  %v2526_v19 = vadd.f32 %v2525_v17, %v2524_v15 }
 0x173   :  { %4380 = vst [vmem:[#allocation4_spill] sm:$0xff] %v4207_v28  ;;  %v1261_v20 = vadd.f32 %v2526_v19, %v1212_v60 }
 0x175   :  { %v4211_v14 = vadd.f32 %v2820_v6, %v1261_v20 }
 0x177   :  { %4381 = vst [vmem:[#allocation10_spill] sm:$0xff] %v4211_v14 }
 0x182   :  { %v2553_v29 = vpop.f32.mrf.mxu0 }
 0x184   :  { %v2581_v23 = vpop.f32.mrf.mxu1  ;;  %v2554_v30 = vpop.f32.mrf.mxu0 }
 0x185   :  { %v2555_v16 = vadd.f32 %v2554_v30, %v2553_v29 }
 0x186   :  { %v2582_v25 = vpop.f32.mrf.mxu1  ;;  %v2556_v34 = vpop.f32.mrf.mxu0 }
 0x187   :  { %v1465_v28 = vadd.f32 %v2555_v16, %v3875_v18 }
 0x188   :  { %v2584_v26 = vpop.f32.mrf.mxu1  ;;  %v2557_v36 = vpop.f32.mrf.mxu0 }
 0x189   :  { %v2558_v14 = vadd.f32 %v2557_v36, %v2556_v34 }
 0x18a   :  { %v2585_v27 = vpop.f32.mrf.mxu1  ;;  %v2559_v41 = vpop.f32.mrf.mxu0 }
 0x18b   :  { %v2586_v13 = vadd.f32 %v2585_v27, %v2584_v26 }
 0x18c   :  { %v4215_v12 = vpop.f32.mrf.mxu1  ;;  %v2560_v42 = vpop.f32.mrf.mxu0 }
 0x18d   :  { %v2561_v47 = vadd.f32 %v2560_v42, %v2559_v41 }
 0x18e   :  { %v4217_v33 = vpop.f32.mrf.mxu1  ;;  %v2562_v45 = vpop.f32.mrf.mxu0 }
 0x18f   :  { %v1473_v16 = vadd.f32 %v2561_v47, %v3875_v18 }
 0x190   :  { %v4219_v37 = vpop.f32.mrf.mxu1  ;;  %v2563_v56 = vpop.f32.mrf.mxu0 }
 0x191   :  { %v2564_v49 = vadd.f32 %v2563_v56, %v2562_v45 }
 0x192   :  { %v4221_v38 = vpop.f32.mrf.mxu1 }
 0x1a2   :  { %v2609_v50 = vpop.f32.mrf.mxu0 }
 0x1a4   :  { %v4223_v54 = vpop.f32.mrf.mxu1  ;;  %v2610_v57 = vpop.f32.mrf.mxu0 }
 0x1a6   :  { %v4225_v43 = vpop.f32.mrf.mxu1  ;;  %v2612_v53 = vpop.f32.mrf.mxu0 }
 0x1a7   :  { %v2639_v36 = vadd.f32 %v4225_v43, %v4223_v54 }
 0x1a8   :  { %v4227_v48 = vpop.f32.mrf.mxu1  ;;  %v2613_v31 = vpop.f32.mrf.mxu0 }
 0x1aa   :  { %v4229_v39 = vpop.f32.mrf.mxu1  ;;  %v2615_v1 = vpop.f32.mrf.mxu0 }
 0x1ac   :  { %v4231_v52 = vpop.f32.mrf.mxu1  ;;  %v2616_v60 = vpop.f32.mrf.mxu0 }
 0x1ad   :  { %4382 = vst [vmem:[#allocation11_spill] sm:$0xff] %v4231_v52 }
 0x1ae   :  { %v4233_v61 = vpop.f32.mrf.mxu1  ;;  %v4239_v5 = vpop.f32.mrf.mxu0 }
 0x1af   :  { %4383 = vst [vmem:[#allocation12_spill] sm:$0xff] %v4233_v61  ;;  %v2614_v61 = vadd.f32 %v2613_v31, %v2612_v53 }
 0x1b0   :  { %v4235_v63 = vpop.f32.mrf.mxu1  ;;  %v4241_v40 = vpop.f32.mrf.mxu0 }
 0x1b1   :  { %4384 = vst [vmem:[#allocation13_spill] sm:$0xff] %v4235_v63  ;;  %v2611_v63 = vadd.f32 %v2610_v57, %v2609_v50 }
 0x1b2   :  { %v4237_v0 = vpop.f32.mrf.mxu1 }
 0x1b3   :  { %4385 = vst [vmem:[#allocation14_spill] sm:$0xff] %v4237_v0 }
 0x1c2   :  { %v4243_v24 = vpop.f32.mrf.mxu0 }
 0x1c3   :  { %4386 = vst [vmem:[#allocation15_spill] sm:$0xff] %v4243_v24  ;;  %v1468_v24 = vadd.f32 %v2558_v14, %v3875_v18  ;;  %v1476_v14 = vadd.f32 %v2564_v49, %v3875_v18  ;;  %v2617_v49 = vadd.f32 %v2616_v60, %v2615_v1 }
 0x1c4   :  { %v2675_v4 = vpop.f32.mrf.mxu1  ;;  %v4245_v62 = vpop.f32.mrf.mxu0 }
 0x1c6   :  { %v2676_v46 = vpop.f32.mrf.mxu1  ;;  %v4247_v8 = vpop.f32.mrf.mxu0 }
 0x1c7   :  { %4387 = vst [vmem:[#allocation16_spill] sm:$0xff] %v4247_v8  ;;  %v2583_v8 = vadd.f32 %v2582_v25, %v2581_v23  ;;  %v2677_v58 = vadd.f32 %v2676_v46, %v2675_v4  ;;  %v2589_v23 = vadd.f32 %v4217_v33, %v4215_v12  ;;  %v4390_v46 = vld [vmem:[#allocation11_spill] sm:$0xff] }
 0x1c8   :  { %v2678_v3 = vpop.f32.mrf.mxu1  ;;  %v4249_v10 = vpop.f32.mrf.mxu0 }
 0x1c9   :  { %4388 = vst [vmem:[#allocation5_spill] sm:$0xff] %v4249_v10  ;;  %v1514_v30 = vadd.f32 %v2583_v8, %v1465_v28  ;;  %v1827_v34 = vadd.f32 %v2677_v58, %v3875_v18  ;;  %v2642_v58 = vadd.f32 %v4229_v39, %v4227_v48  ;;  %v1522_v56 = vadd.f32 %v2589_v23, %v1473_v16 }
 0x1ca   :  { %v2679_v2 = vpop.f32.mrf.mxu1 }
 0x1cb   :  { %v2680_v52 = vadd.f32 %v2679_v2, %v2678_v3  ;;  %v1563_v27 = vadd.f32 %v2611_v63, %v1514_v30  ;;  %v4391_v3 = vld [vmem:[#allocation12_spill] sm:$0xff]  ;;  %v4397_v30 = vld [vmem:[#allocation2_spill] sm:$0xff] }
 0x1cc   :  { %v2681_v35 = vpop.f32.mrf.mxu1  ;;  %v2645_v2 = vadd.f32 %v4391_v3, %v4390_v46 }
 0x1cd   :  { %v1830_v47 = vadd.f32 %v2680_v52, %v3875_v18  ;;  %v1612_v43 = vadd.f32 %v2639_v36, %v1563_v27 }
 0x1ce   :  { %v2682_v6 = vpop.f32.mrf.mxu1 }
 0x1cf   :  { %v2683_v45 = vadd.f32 %v2682_v6, %v2681_v35  ;;  %v1661_v1 = vadd.f32 %v4245_v62, %v1612_v43  ;;  %v4395_v62 = vld [vmem:[#allocation14_spill] sm:$0xff] }
 0x1d0   :  { %v2684_v9 = vpop.f32.mrf.mxu1 }
 0x1d1   :  { %v1835_v60 = vadd.f32 %v2683_v45, %v3875_v18 }
 0x1d2   :  { %v2685_v51 = vpop.f32.mrf.mxu1 }
 0x1d3   :  { %v2686_v48 = vadd.f32 %v2685_v51, %v2684_v9 }
 0x1e2   :  { %v2703_v7 = vpop.f32.mrf.mxu0 }
 0x1e4   :  { %v2731_v55 = vpop.f32.mrf.mxu1  ;;  %v2704_v15 = vpop.f32.mrf.mxu0 }
 0x1e5   :  { %v2705_v10 = vadd.f32 %v2704_v15, %v2703_v7 }
 0x1e6   :  { %v2732_v32 = vpop.f32.mrf.mxu1  ;;  %v2706_v17 = vpop.f32.mrf.mxu0 }
 0x1e7   :  { %v1876_v41 = vadd.f32 %v2705_v10, %v1827_v34  ;;  %v2733_v42 = vadd.f32 %v2732_v32, %v2731_v55  ;;  %v4394_v55 = vld [vmem:[#allocation13_spill] sm:$0xff]  ;;  %v1838_v32 = vadd.f32 %v2686_v48, %v3875_v18 }
 0x1e8   :  { %v2734_v19 = vpop.f32.mrf.mxu1  ;;  %v2707_v20 = vpop.f32.mrf.mxu0  ;;  %v2648_v15 = vadd.f32 %v4395_v62, %v4394_v55 }
 0x1e9   :  { %v2708_v25 = vadd.f32 %v2707_v20, %v2706_v17  ;;  %v1925_v63 = vadd.f32 %v2733_v42, %v1876_v41  ;;  %v4396_v20 = vld [vmem:[#allocation7_spill] sm:$0xff] }
 0x1ea   :  { %v2735_v22 = vpop.f32.mrf.mxu1  ;;  %v2709_v21 = vpop.f32.mrf.mxu0  ;;  %v4398_v34 = vmax.f32 %v4396_v20, %v4397_v30 }
 0x1eb   :  { %v1879_v50 = vadd.f32 %v2708_v25, %v1830_v47  ;;  %v2736_v57 = vadd.f32 %v2735_v22, %v2734_v19  ;;  %v4400_v25 = vld [vmem:[#allocation3_spill] sm:$0xff] }
 0x1ec   :  { %v4251_v11 = vpop.f32.mrf.mxu1  ;;  %v2710_v59 = vpop.f32.mrf.mxu0  ;;  %v1675_v16 = vmax.f32 %v4398_v34, %v1661_v1 }
 0x1ed   :  { %4389 = vst [vmem:[#allocation17_spill] sm:$0xff] %v4251_v11  ;;  %v1517_v11 = vadd.f32 %v2586_v13, %v1468_v24  ;;  %v2592_v13 = vadd.f32 %v4221_v38, %v4219_v37  ;;  %v2711_v31 = vadd.f32 %v2710_v59, %v2709_v21  ;;  %v4392_v24 = vld [vmem:[#allocation5_spill] sm:$0xff]  ;;  %v1928_v21 = vadd.f32 %v2736_v57, %v1879_v50  ;;  %v4403_v50 = vld [vmem:[#allocation16_spill] sm:$0xff] }
 0x1ee   :  { %v2738_v44 = vpop.f32.mrf.mxu1  ;;  %v2712_v0 = vpop.f32.mrf.mxu0 }
 0x1ef   :  { %v1566_v28 = vadd.f32 %v2614_v61, %v1517_v11  ;;  %v1525_v37 = vadd.f32 %v2592_v13, %v1476_v14  ;;  %v2620_v11 = vadd.f32 %v4241_v40, %v4239_v5  ;;  %v1571_v61 = vadd.f32 %v2617_v49, %v1522_v56  ;;  %v4399_v14 = vld [vmem:[#allocation9_spill] sm:$0xff] }
 0x1f0   :  { %v2740_v29 = vpop.f32.mrf.mxu1  ;;  %v2713_v26 = vpop.f32.mrf.mxu0  ;;  %v1884_v5 = vadd.f32 %v2711_v31, %v1835_v60 }
 0x1f1   :  { %v1615_v38 = vadd.f32 %v2642_v58, %v1566_v28  ;;  %v2714_v35 = vadd.f32 %v2713_v26, %v2712_v0  ;;  %v1574_v7 = vadd.f32 %v2620_v11, %v1525_v37  ;;  %v1620_v23 = vadd.f32 %v2645_v2, %v1571_v61  ;;  %v4408_v61 = vld [vmem:[#allocation10_spill] sm:$0xff] }
 0x1f2   :  { %v2741_v12 = vpop.f32.mrf.mxu1  ;;  %v4401_v26 = vmax.f32 %v4399_v14, %v4400_v25 }
 0x1f3   :  { %v1664_v59 = vadd.f32 %v4392_v24, %v1615_v38  ;;  %v1887_v27 = vadd.f32 %v2714_v35, %v1838_v32  ;;  %v2742_v36 = vadd.f32 %v2741_v12, %v2740_v29  ;;  %v1623_v18 = vadd.f32 %v2648_v15, %v1574_v7  ;;  %v4404_v29 = vld [vmem:[#allocation6_spill] sm:$0xff]  ;;  %v4405_v12 = vld [vmem:[#allocation4_spill] sm:$0xff] }
 0x1f4   :  { %v4393_v40 = vld [vmem:[#allocation17_spill] sm:$0xff]  ;;  %v4406_v11 = vmax.f32 %v4404_v29, %v4405_v12 }
 0x1f5   :  { %v2739_v9 = vadd.f32 %v2738_v44, %v4393_v40  ;;  %v1676_v44 = vmax.f32 %v4401_v26, %v1664_v59  ;;  %v1672_v57 = vadd.f32 %v4403_v50, %v1623_v18 }
 0x1f7   :  { %v1933_v42 = vadd.f32 %v2739_v9, %v1884_v5 }
 0x202   :  { %v2759_v33 = vpop.f32.mrf.mxu0 }
 0x204   :  { %v2760_v53 = vpop.f32.mrf.mxu0  ;;  %v2859_v54 = vpop.f32.mrf.mxu1 }
 0x205   :  { %v2761_v4 = vadd.f32 %v2760_v53, %v2759_v33  ;;  %v4402_v33 = vld [vmem:[#allocation15_spill] sm:$0xff]  ;;  %v1936_v53 = vadd.f32 %v2742_v36, %v1887_v27 }
 0x206   :  { %v2762_v39 = vpop.f32.mrf.mxu0  ;;  %v2022_v52 = vpop.f32.mrf.mxu1  ;;  %v1669_v49 = vadd.f32 %v4402_v33, %v1620_v23 }
 0x207   :  { %v1974_v22 = vadd.f32 %v2761_v4, %v1925_v63 }
 0x208   :  { %v2763_v6 = vpop.f32.mrf.mxu0  ;;  %v2860_v8 = vpop.f32.mrf.mxu1  ;;  %v1677_v38 = vmax.f32 %v4406_v11, %v1669_v49 }
 0x209   :  { %v2764_v10 = vadd.f32 %v2763_v6, %v2762_v39  ;;  %v2023_v51 = vadd.f32 %v2022_v52, %v1974_v22  ;;  %v4407_v52 = vld [vmem:[#allocation8_spill] sm:$0xff] }
 0x20a   :  { %v2765_v17 = vpop.f32.mrf.mxu0  ;;  %v2025_v19 = vpop.f32.mrf.mxu1  ;;  %v4409_v1 = vmax.f32 %v4407_v52, %v4408_v61 }
 0x20b   :  { %v1977_v0 = vadd.f32 %v2764_v10, %v1928_v21  ;;  %v2037_v13 = vmax.f32 %v1675_v16, %v2023_v51 }
 0x20c   :  { %v2766_v41 = vpop.f32.mrf.mxu0  ;;  %v1678_v60 = vmax.f32 %v4409_v1, %v1672_v57 }
 0x20d   :  { %v2767_v28 = vadd.f32 %v2766_v41, %v2765_v17  ;;  %v2026_v58 = vadd.f32 %v2025_v19, %v1977_v0  ;;  %v2041_v63 = vmax.f32 %v2037_v13, 0.0 }
 0x20e   :  { %v2768_v47 = vpop.f32.mrf.mxu0 }
 0x20f   :  { %v1982_v45 = vadd.f32 %v2767_v28, %v1933_v42  ;;  %v2038_v56 = vmax.f32 %v1676_v44, %v2026_v58 }
 0x210   :  { %v2769_v43 = vpop.f32.mrf.mxu0 }
 0x211   :  { %v2031_v31 = vadd.f32 %v2859_v54, %v1982_v45  ;;  %v2042_v4 = vmax.f32 %v2038_v56, 0.0  ;;  %v2770_v37 = vadd.f32 %v2769_v43, %v2768_v47 }
 0x213   :  { %v2285_v48 = vpack.c.bf16 %v2042_v4, %v2041_v63  ;;  %v1985_v39 = vadd.f32 %v2770_v37, %v1936_v53  ;;  %v2039_v22 = vmax.f32 %v1677_v38, %v2031_v31 }
 0x215   :  { %2286 = vst [vmem:[%s4301_s3] sm:$0xff] %v2285_v48   ;;  %v2034_v46 = vadd.f32 %v2860_v8, %v1985_v39  ;;  %v2043_v54 = vmax.f32 %v2039_v22, 0.0 }
 0x217   :  { %v2040_v3 = vmax.f32 %v1678_v60, %v2034_v46 }
 0x219   :  { %v2044_v2 = vmax.f32 %v2040_v3, 0.0 }
 0x21b   :  { %v2290_v24 = vpack.c.bf16 %v2044_v2, %v2043_v54 }
 0x21d   :  { %2292 = vst [vmem:[%s4301_s3 + $0x8] sm:$0xff] %v2290_v24  }

</bundles_post_ra>
